<compile_context>
chip_gen: v7x
topology: tpu7x:2x2x1
jax: 0.10.0
libtpu: 0.0.40
codegen_flags: <defaults>
</compile_context>

<pallas_src>
import jax
import jax.numpy as jnp
import numpy as np
from jax import lax
from jax.experimental import pallas as pl
from jax.experimental.pallas import tpu as pltpu

HIDDEN = 20
INPUT_S = 11
SEQ_LEN = 15

HP = 32                      # lane-aligned hidden size (4*HP = 128 = one vreg width)
KP = 16                      # padded input-feature rows for the x @ Wih matmul

# Weight-slab row layout (all sections start on an 8-row boundary).
ROW_WIH = 0                  # rows [0, KP)        : Wih^T (I rows used, rest zero)
ROW_WHH = KP                 # rows [KP, KP+HP)    : Whh^T (H rows used, rest zero)
ROW_GBIAS = KP + HP          # row 48              : b_ih + b_hh (per-gate padded, scaled)
ROW_BLIN = ROW_GBIAS + 1     # row 49, lane 0      : linear-head bias
ROW_WLB = ROW_GBIAS + 8      # rows [56, 56+T*Bp)  : head weight broadcast over batch


def pack_lstm_params(w_ih, w_hh, b_ih, b_hh, w_lin, b_lin, batch):
    """One-time packing of all LSTM + Linear parameters into a single
    (ROW_WLB + T*Bp, 128) f32 slab.  Run once at model init; NOT per call."""
    H, I, T, Hp = HIDDEN, INPUT_S, SEQ_LEN, HP
    Bp = max(8, ((batch + 7) // 8) * 8)          # sublane-aligned batch

    def pad_gates(w):                            # (rows, 4H) -> (rows, 4Hp), per gate
        rows = w.shape[0]
        w4 = w.reshape(rows, 4, H)
        w4 = jnp.pad(w4, ((0, 0), (0, 0), (0, Hp - H)))
        return w4.reshape(rows, 4 * Hp)

    # tanh-via-sigmoid trick: scale the g-gate columns by 2 (kernel does 2*sig-1).
    gscale = jnp.concatenate([jnp.ones((Hp,), jnp.float32),
                              jnp.ones((Hp,), jnp.float32),
                              jnp.full((Hp,), 2.0, jnp.float32),
                              jnp.ones((Hp,), jnp.float32)])[None, :]

    wih_p = pad_gates(jnp.asarray(w_ih, jnp.float32).T) * gscale        # (I, 128)
    wih_p = jnp.pad(wih_p, ((0, KP - I), (0, 0)))                       # (KP, 128)

    whh_p = pad_gates(jnp.asarray(w_hh, jnp.float32).T) * gscale        # (H, 128)
    whh_p = jnp.pad(whh_p, ((0, Hp - H), (0, 0)))                       # (Hp, 128)

    bias = (jnp.asarray(b_ih, jnp.float32)
            + jnp.asarray(b_hh, jnp.float32))[None, :]                  # (1, 4H)
    bias_p = pad_gates(bias) * gscale                                   # (1, 128)

    blin_row = jnp.zeros((1, 4 * Hp), jnp.float32).at[0, 0].set(
        jnp.asarray(b_lin, jnp.float32).reshape(()))                    # (1, 128)
    pad_rows = jnp.zeros((ROW_WLB - ROW_BLIN - 1, 4 * Hp), jnp.float32)
    bias_block = jnp.concatenate([bias_p, blin_row, pad_rows], axis=0)  # (8, 128)

    # Head weight (1, T*H) -> (T, H), padded, pre-broadcast over the batch so the
    # kernel reads an aligned (Bp, Hp) tile per step (no per-iter broadcast_in_dim).
    wlin = jnp.asarray(w_lin, jnp.float32).reshape(T, H)
    wlin = jnp.pad(wlin, ((0, 0), (0, Hp - H)))                         # (T, Hp)
    wlb = jnp.broadcast_to(wlin[:, None, :], (T, Bp, Hp)).reshape(T * Bp, Hp)
    wlb = jnp.pad(wlb, ((0, 0), (0, 4 * Hp - Hp)))                      # (T*Bp, 128)

    w_slab = jnp.concatenate([wih_p, whh_p, bias_block, wlb], axis=0)   # (176, 128)
    return jax.device_put(w_slab)


def _make_kernel(T, Bp):
    Hp = HP

    def lstm_kernel(x_ref, w_ref, out_ref, gx_ref):
        # x_ref:  (T*Bp, KP)  time-major input, rows t*Bp:(t+1)*Bp are x_t
        # w_ref:  (ROW_WLB + T*Bp, 128) packed weight slab (see layout above)
        # gx_ref: (T*Bp, 128) VMEM scratch for the hoisted input projection
        wih = w_ref[ROW_WIH:ROW_WIH + KP, :]            # (KP, 128)
        whh = w_ref[ROW_WHH:ROW_WHH + Hp, :]            # (Hp, 128), loaded once
        gbias = w_ref[ROW_GBIAS:ROW_GBIAS + 1, :]       # (1, 128)

        # Non-recurrent input projection for all timesteps at once (+ fused bias),
        # staged to VMEM scratch so the unrolled loop doesn't hold it in vregs.
        gx_ref[...] = jnp.dot(x_ref[...], wih,
                              preferred_element_type=jnp.float32) + gbias

        h = jnp.zeros((Bp, Hp), jnp.float32)
        c = jnp.zeros((Bp, Hp), jnp.float32)
        acc = jnp.zeros((Bp, Hp), jnp.float32)

        # Fully unrolled recurrence (T static). Per step: one MXU matmul on h,
        # one sigmoid over the whole 128-lane gate tile, one tanh, VPU FMAs.
        for t in range(T):
            gates = gx_ref[t * Bp:(t + 1) * Bp, :] + jnp.dot(
                h, whh, preferred_element_type=jnp.float32)      # (Bp, 128)
            s = jax.nn.sigmoid(gates)
            i = s[:, 0:Hp]
            f = s[:, Hp:2 * Hp]
            g = 2.0 * s[:, 2 * Hp:3 * Hp] - 1.0   # tanh(x) = 2*sigmoid(2x) - 1
            o = s[:, 3 * Hp:4 * Hp]
            c = f * c + i * g
            h = o * jnp.tanh(c)
            # Fused Linear head: aligned (Bp, Hp) tile from the slab, one FMA.
            acc = acc + h * w_ref[ROW_WLB + t * Bp:ROW_WLB + (t + 1) * Bp, 0:Hp]

        # Single cross-lane reduction for Linear(hidden*seq_len -> 1) + bias.
        out_ref[...] = jnp.sum(acc, axis=-1, keepdims=True) + w_ref[ROW_BLIN, 0]

    return lstm_kernel


@jax.jit
def lstm_forward(x, w_slab):
    """x: (B, T, I) float32, PyTorch batch_first convention. Returns (B, 1)."""
    B, T, I = x.shape
    Bp = (w_slab.shape[0] - ROW_WLB) // T        # batch pad baked into the slab

    # Minimal per-call prep: time-major, batch/lane padded, flattened.
    # (Callers that already hold x in this layout can feed it directly.)
    x_tm = jnp.transpose(jnp.asarray(x, jnp.float32), (1, 0, 2))     # (T, B, I)
    x_tm = jnp.pad(x_tm, ((0, 0), (0, Bp - B), (0, KP - I)))         # (T, Bp, KP)
    x_tm = x_tm.reshape(T * Bp, KP)

    vmem = pl.BlockSpec(memory_space=pltpu.MemorySpace.VMEM)
    out = pl.pallas_call(
        _make_kernel(T, Bp),
        out_shape=jax.ShapeDtypeStruct((Bp, 1), jnp.float32),
        in_specs=[vmem, vmem],
        out_specs=vmem,
        scratch_shapes=[pltpu.VMEM((T * Bp, 4 * HP), jnp.float32)],
    )(x_tm, w_slab)
    return out[:B]


def lstm_reference(x, w_ih, w_hh, b_ih, b_hh, w_lin, b_lin):
    """Pure-JAX reference matching torch.nn.LSTM + Linear semantics."""
    B, T, I = x.shape
    H = w_hh.shape[1]

    def step(carry, xt):
        h, c = carry
        gates = xt @ w_ih.T + b_ih + h @ w_hh.T + b_hh
        i = jax.nn.sigmoid(gates[:, 0:H])
        f = jax.nn.sigmoid(gates[:, H:2 * H])
        g = jnp.tanh(gates[:, 2 * H:3 * H])
        o = jax.nn.sigmoid(gates[:, 3 * H:4 * H])
        c = f * c + i * g
        h = o * jnp.tanh(c)
        return (h, c), h

    h0 = jnp.zeros((B, H), jnp.float32)
    c0 = jnp.zeros((B, H), jnp.float32)
    _, hs = lax.scan(step, (h0, c0), jnp.transpose(x, (1, 0, 2)))
    seq = jnp.transpose(hs, (1, 0, 2)).reshape(B, T * H)
    return seq @ w_lin.T + b_lin


if __name__ == "__main__":
    B = 4
    key = jax.random.PRNGKey(0)
    keys = jax.random.split(key, 7)
    k = 1.0 / np.sqrt(HIDDEN)
    w_ih = jax.random.uniform(keys[0], (4 * HIDDEN, INPUT_S), jnp.float32, -k, k)
    w_hh = jax.random.uniform(keys[1], (4 * HIDDEN, HIDDEN), jnp.float32, -k, k)
    b_ih = jax.random.uniform(keys[2], (4 * HIDDEN,), jnp.float32, -k, k)
    b_hh = jax.random.uniform(keys[3], (4 * HIDDEN,), jnp.float32, -k, k)
    kl = 1.0 / np.sqrt(HIDDEN * SEQ_LEN)
    w_lin = jax.random.uniform(keys[4], (1, HIDDEN * SEQ_LEN), jnp.float32, -kl, kl)
    b_lin = jax.random.uniform(keys[5], (1,), jnp.float32, -kl, kl)
    x = jax.random.normal(keys[6], (B, SEQ_LEN, INPUT_S), jnp.float32)

    # One-time packing at "model init" time (hoisted out of the per-call path).
    w_slab = pack_lstm_params(w_ih, w_hh, b_ih, b_hh, w_lin, b_lin, batch=B)

    out = lstm_forward(x, w_slab)
    out = jax.block_until_ready(out)

    ref = lstm_reference(x, w_ih, w_hh, b_ih, b_hh, w_lin, b_lin)
    ref = jax.block_until_ready(ref)

    assert out.shape == (B, 1), out.shape
    np.testing.assert_allclose(np.asarray(out), np.asarray(ref), rtol=1e-2, atol=1e-2)
    print("KERNEL_OK")
</pallas_src>

<mosaic_0001>
module attributes {stable_mosaic.version = 11 : i64} {
  func.func @lstm_kernel(%arg0: memref<120x16xf32, #tpu.memory_space<vmem>>, %arg1: memref<176x128xf32, #tpu.memory_space<vmem>>, %arg2: memref<8x1xf32, #tpu.memory_space<vmem>>, %arg3: memref<120x128xf32, #tpu.memory_space<vmem>>) attributes {dimension_semantics = [], scalar_prefetch = 0 : i64, scratch_operands = 1 : i64, tpu.core_type = #tpu.core_type<tc>} {
    %c0 = arith.constant 0 : index
    %c0_0 = arith.constant 0 : index
    %0 = vector.load %arg1[%c0, %c0_0] : memref<176x128xf32, #tpu.memory_space<vmem>>, vector<16x128xf32>
    %c16 = arith.constant 16 : index
    %c0_1 = arith.constant 0 : index
    %1 = vector.load %arg1[%c16, %c0_1] : memref<176x128xf32, #tpu.memory_space<vmem>>, vector<32x128xf32>
    %c48 = arith.constant 48 : index
    %c0_2 = arith.constant 0 : index
    %2 = vector.load %arg1[%c48, %c0_2] : memref<176x128xf32, #tpu.memory_space<vmem>>, vector<1x128xf32>
    %c0_3 = arith.constant 0 : index
    %c0_4 = arith.constant 0 : index
    %3 = vector.load %arg0[%c0_3, %c0_4] : memref<120x16xf32, #tpu.memory_space<vmem>>, vector<120x16xf32>
    %cst = arith.constant dense<0.000000e+00> : vector<120x128xf32>
    %4 = tpu.matmul %3, %0, %cst {dimension_numbers = #tpu.dot_dimension_numbers<[1], [0], [0], [1], [0, 0, 1, 1], [], []>} : vector<120x16xf32>, vector<16x128xf32>, vector<120x128xf32> -> vector<120x128xf32>
    %5 = vector.broadcast %2 : vector<1x128xf32> to vector<120x128xf32>
    %6 = arith.addf %4, %5 : vector<120x128xf32>
    %c0_5 = arith.constant 0 : index
    %c0_6 = arith.constant 0 : index
    %7 = vector.load %arg3[%c0_5, %c0_6] : memref<120x128xf32, #tpu.memory_space<vmem>>, vector<120x128xf32>
    tpu.vector_store %arg3[%c0_5, %c0_6], %6 {strides = array<i32>} : memref<120x128xf32, #tpu.memory_space<vmem>>, vector<120x128xf32>,
    %cst_7 = arith.constant 0.000000e+00 : f32
    %8 = vector.broadcast %cst_7 : f32 to vector<8x32xf32>
    %cst_8 = arith.constant 0.000000e+00 : f32
    %9 = vector.broadcast %cst_8 : f32 to vector<8x32xf32>
    %cst_9 = arith.constant 0.000000e+00 : f32
    %10 = vector.broadcast %cst_9 : f32 to vector<8x32xf32>
    %c0_10 = arith.constant 0 : index
    %c0_11 = arith.constant 0 : index
    %11 = vector.load %arg3[%c0_10, %c0_11] : memref<120x128xf32, #tpu.memory_space<vmem>>, vector<8x128xf32>
    %cst_12 = arith.constant dense<0.000000e+00> : vector<8x128xf32>
    %12 = tpu.matmul %8, %1, %cst_12 {dimension_numbers = #tpu.dot_dimension_numbers<[1], [0], [0], [1], [0, 0, 1, 1], [], []>} : vector<8x32xf32>, vector<32x128xf32>, vector<8x128xf32> -> vector<8x128xf32>
    %13 = arith.addf %11, %12 : vector<8x128xf32>
    %14 = arith.negf %13 : vector<8x128xf32>
    %15 = math.exp %14 : vector<8x128xf32>
    %cst_13 = arith.constant 1.000000e+00 : f32
    %16 = vector.broadcast %cst_13 : f32 to vector<8x128xf32>
    %17 = arith.addf %16, %15 : vector<8x128xf32>
    %18 = arith.divf %16, %17 : vector<8x128xf32>
    %19 = vector.extract_strided_slice %18 {offsets = [0, 0], sizes = [8, 32], strides = [1, 1]} : vector<8x128xf32> to vector<8x32xf32>
    %20 = vector.extract_strided_slice %18 {offsets = [0, 32], sizes = [8, 32], strides = [1, 1]} : vector<8x128xf32> to vector<8x32xf32>
    %21 = vector.extract_strided_slice %18 {offsets = [0, 64], sizes = [8, 32], strides = [1, 1]} : vector<8x128xf32> to vector<8x32xf32>
    %cst_14 = arith.constant 2.000000e+00 : f32
    %22 = vector.broadcast %cst_14 : f32 to vector<8x32xf32>
    %23 = arith.mulf %22, %21 : vector<8x32xf32>
    %cst_15 = arith.constant 1.000000e+00 : f32
    %24 = vector.broadcast %cst_15 : f32 to vector<8x32xf32>
    %25 = arith.subf %23, %24 : vector<8x32xf32>
    %26 = vector.extract_strided_slice %18 {offsets = [0, 96], sizes = [8, 32], strides = [1, 1]} : vector<8x128xf32> to vector<8x32xf32>
    %27 = arith.mulf %20, %9 : vector<8x32xf32>
    %28 = arith.mulf %19, %25 : vector<8x32xf32>
    %29 = arith.addf %27, %28 : vector<8x32xf32>
    %30 = math.tanh %29 : vector<8x32xf32>
    %31 = arith.mulf %26, %30 : vector<8x32xf32>
    %c56 = arith.constant 56 : index
    %c0_16 = arith.constant 0 : index
    %32 = vector.load %arg1[%c56, %c0_16] : memref<176x128xf32, #tpu.memory_space<vmem>>, vector<8x32xf32>
    %33 = arith.mulf %31, %32 : vector<8x32xf32>
    %34 = arith.addf %10, %33 : vector<8x32xf32>
    %c8 = arith.constant 8 : index
    %c0_17 = arith.constant 0 : index
    %35 = vector.load %arg3[%c8, %c0_17] : memref<120x128xf32, #tpu.memory_space<vmem>>, vector<8x128xf32>
    %cst_18 = arith.constant dense<0.000000e+00> : vector<8x128xf32>
    %36 = tpu.matmul %31, %1, %cst_18 {dimension_numbers = #tpu.dot_dimension_numbers<[1], [0], [0], [1], [0, 0, 1, 1], [], []>} : vector<8x32xf32>, vector<32x128xf32>, vector<8x128xf32> -> vector<8x128xf32>
    %37 = arith.addf %35, %36 : vector<8x128xf32>
    %38 = arith.negf %37 : vector<8x128xf32>
    %39 = math.exp %38 : vector<8x128xf32>
    %cst_19 = arith.constant 1.000000e+00 : f32
    %40 = vector.broadcast %cst_19 : f32 to vector<8x128xf32>
    %41 = arith.addf %40, %39 : vector<8x128xf32>
    %42 = arith.divf %40, %41 : vector<8x128xf32>
    %43 = vector.extract_strided_slice %42 {offsets = [0, 0], sizes = [8, 32], strides = [1, 1]} : vector<8x128xf32> to vector<8x32xf32>
    %44 = vector.extract_strided_slice %42 {offsets = [0, 32], sizes = [8, 32], strides = [1, 1]} : vector<8x128xf32> to vector<8x32xf32>
    %45 = vector.extract_strided_slice %42 {offsets = [0, 64], sizes = [8, 32], strides = [1, 1]} : vector<8x128xf32> to vector<8x32xf32>
    %cst_20 = arith.constant 2.000000e+00 : f32
    %46 = vector.broadcast %cst_20 : f32 to vector<8x32xf32>
    %47 = arith.mulf %46, %45 : vector<8x32xf32>
    %cst_21 = arith.constant 1.000000e+00 : f32
    %48 = vector.broadcast %cst_21 : f32 to vector<8x32xf32>
    %49 = arith.subf %47, %48 : vector<8x32xf32>
    %50 = vector.extract_strided_slice %42 {offsets = [0, 96], sizes = [8, 32], strides = [1, 1]} : vector<8x128xf32> to vector<8x32xf32>
    %51 = arith.mulf %44, %29 : vector<8x32xf32>
    %52 = arith.mulf %43, %49 : vector<8x32xf32>
    %53 = arith.addf %51, %52 : vector<8x32xf32>
    %54 = math.tanh %53 : vector<8x32xf32>
    %55 = arith.mulf %50, %54 : vector<8x32xf32>
    %c64 = arith.constant 64 : index
    %c0_22 = arith.constant 0 : index
    %56 = vector.load %arg1[%c64, %c0_22] : memref<176x128xf32, #tpu.memory_space<vmem>>, vector<8x32xf32>
    %57 = arith.mulf %55, %56 : vector<8x32xf32>
    %58 = arith.addf %34, %57 : vector<8x32xf32>
    %c16_23 = arith.constant 16 : index
    %c0_24 = arith.constant 0 : index
    %59 = vector.load %arg3[%c16_23, %c0_24] : memref<120x128xf32, #tpu.memory_space<vmem>>, vector<8x128xf32>
    %cst_25 = arith.constant dense<0.000000e+00> : vector<8x128xf32>
    %60 = tpu.matmul %55, %1, %cst_25 {dimension_numbers = #tpu.dot_dimension_numbers<[1], [0], [0], [1], [0, 0, 1, 1], [], []>} : vector<8x32xf32>, vector<32x128xf32>, vector<8x128xf32> -> vector<8x128xf32>
    %61 = arith.addf %59, %60 : vector<8x128xf32>
    %62 = arith.negf %61 : vector<8x128xf32>
    %63 = math.exp %62 : vector<8x128xf32>
    %cst_26 = arith.constant 1.000000e+00 : f32
    %64 = vector.broadcast %cst_26 : f32 to vector<8x128xf32>
    %65 = arith.addf %64, %63 : vector<8x128xf32>
    %66 = arith.divf %64, %65 : vector<8x128xf32>
    %67 = vector.extract_strided_slice %66 {offsets = [0, 0], sizes = [8, 32], strides = [1, 1]} : vector<8x128xf32> to vector<8x32xf32>
    %68 = vector.extract_strided_slice %66 {offsets = [0, 32], sizes = [8, 32], strides = [1, 1]} : vector<8x128xf32> to vector<8x32xf32>
    %69 = vector.extract_strided_slice %66 {offsets = [0, 64], sizes = [8, 32], strides = [1, 1]} : vector<8x128xf32> to vector<8x32xf32>
    %cst_27 = arith.constant 2.000000e+00 : f32
    %70 = vector.broadcast %cst_27 : f32 to vector<8x32xf32>
    %71 = arith.mulf %70, %69 : vector<8x32xf32>
    %cst_28 = arith.constant 1.000000e+00 : f32
    %72 = vector.broadcast %cst_28 : f32 to vector<8x32xf32>
    %73 = arith.subf %71, %72 : vector<8x32xf32>
    %74 = vector.extract_strided_slice %66 {offsets = [0, 96], sizes = [8, 32], strides = [1, 1]} : vector<8x128xf32> to vector<8x32xf32>
    %75 = arith.mulf %68, %53 : vector<8x32xf32>
    %76 = arith.mulf %67, %73 : vector<8x32xf32>
    %77 = arith.addf %75, %76 : vector<8x32xf32>
    %78 = math.tanh %77 : vector<8x32xf32>
    %79 = arith.mulf %74, %78 : vector<8x32xf32>
    %c72 = arith.constant 72 : index
    %c0_29 = arith.constant 0 : index
    %80 = vector.load %arg1[%c72, %c0_29] : memref<176x128xf32, #tpu.memory_space<vmem>>, vector<8x32xf32>
    %81 = arith.mulf %79, %80 : vector<8x32xf32>
    %82 = arith.addf %58, %81 : vector<8x32xf32>
    %c24 = arith.constant 24 : index
    %c0_30 = arith.constant 0 : index
    %83 = vector.load %arg3[%c24, %c0_30] : memref<120x128xf32, #tpu.memory_space<vmem>>, vector<8x128xf32>
    %cst_31 = arith.constant dense<0.000000e+00> : vector<8x128xf32>
    %84 = tpu.matmul %79, %1, %cst_31 {dimension_numbers = #tpu.dot_dimension_numbers<[1], [0], [0], [1], [0, 0, 1, 1], [], []>} : vector<8x32xf32>, vector<32x128xf32>, vector<8x128xf32> -> vector<8x128xf32>
    %85 = arith.addf %83, %84 : vector<8x128xf32>
    %86 = arith.negf %85 : vector<8x128xf32>
    %87 = math.exp %86 : vector<8x128xf32>
    %cst_32 = arith.constant 1.000000e+00 : f32
    %88 = vector.broadcast %cst_32 : f32 to vector<8x128xf32>
    %89 = arith.addf %88, %87 : vector<8x128xf32>
    %90 = arith.divf %88, %89 : vector<8x128xf32>
    %91 = vector.extract_strided_slice %90 {offsets = [0, 0], sizes = [8, 32], strides = [1, 1]} : vector<8x128xf32> to vector<8x32xf32>
    %92 = vector.extract_strided_slice %90 {offsets = [0, 32], sizes = [8, 32], strides = [1, 1]} : vector<8x128xf32> to vector<8x32xf32>
    %93 = vector.extract_strided_slice %90 {offsets = [0, 64], sizes = [8, 32], strides = [1, 1]} : vector<8x128xf32> to vector<8x32xf32>
    %cst_33 = arith.constant 2.000000e+00 : f32
    %94 = vector.broadcast %cst_33 : f32 to vector<8x32xf32>
    %95 = arith.mulf %94, %93 : vector<8x32xf32>
    %cst_34 = arith.constant 1.000000e+00 : f32
    %96 = vector.broadcast %cst_34 : f32 to vector<8x32xf32>
    %97 = arith.subf %95, %96 : vector<8x32xf32>
    %98 = vector.extract_strided_slice %90 {offsets = [0, 96], sizes = [8, 32], strides = [1, 1]} : vector<8x128xf32> to vector<8x32xf32>
    %99 = arith.mulf %92, %77 : vector<8x32xf32>
    %100 = arith.mulf %91, %97 : vector<8x32xf32>
    %101 = arith.addf %99, %100 : vector<8x32xf32>
    %102 = math.tanh %101 : vector<8x32xf32>
    %103 = arith.mulf %98, %102 : vector<8x32xf32>
    %c80 = arith.constant 80 : index
    %c0_35 = arith.constant 0 : index
    %104 = vector.load %arg1[%c80, %c0_35] : memref<176x128xf32, #tpu.memory_space<vmem>>, vector<8x32xf32>
    %105 = arith.mulf %103, %104 : vector<8x32xf32>
    %106 = arith.addf %82, %105 : vector<8x32xf32>
    %c32 = arith.constant 32 : index
    %c0_36 = arith.constant 0 : index
    %107 = vector.load %arg3[%c32, %c0_36] : memref<120x128xf32, #tpu.memory_space<vmem>>, vector<8x128xf32>
    %cst_37 = arith.constant dense<0.000000e+00> : vector<8x128xf32>
    %108 = tpu.matmul %103, %1, %cst_37 {dimension_numbers = #tpu.dot_dimension_numbers<[1], [0], [0], [1], [0, 0, 1, 1], [], []>} : vector<8x32xf32>, vector<32x128xf32>, vector<8x128xf32> -> vector<8x128xf32>
    %109 = arith.addf %107, %108 : vector<8x128xf32>
    %110 = arith.negf %109 : vector<8x128xf32>
    %111 = math.exp %110 : vector<8x128xf32>
    %cst_38 = arith.constant 1.000000e+00 : f32
    %112 = vector.broadcast %cst_38 : f32 to vector<8x128xf32>
    %113 = arith.addf %112, %111 : vector<8x128xf32>
    %114 = arith.divf %112, %113 : vector<8x128xf32>
    %115 = vector.extract_strided_slice %114 {offsets = [0, 0], sizes = [8, 32], strides = [1, 1]} : vector<8x128xf32> to vector<8x32xf32>
    %116 = vector.extract_strided_slice %114 {offsets = [0, 32], sizes = [8, 32], strides = [1, 1]} : vector<8x128xf32> to vector<8x32xf32>
    %117 = vector.extract_strided_slice %114 {offsets = [0, 64], sizes = [8, 32], strides = [1, 1]} : vector<8x128xf32> to vector<8x32xf32>
    %cst_39 = arith.constant 2.000000e+00 : f32
    %118 = vector.broadcast %cst_39 : f32 to vector<8x32xf32>
    %119 = arith.mulf %118, %117 : vector<8x32xf32>
    %cst_40 = arith.constant 1.000000e+00 : f32
    %120 = vector.broadcast %cst_40 : f32 to vector<8x32xf32>
    %121 = arith.subf %119, %120 : vector<8x32xf32>
    %122 = vector.extract_strided_slice %114 {offsets = [0, 96], sizes = [8, 32], strides = [1, 1]} : vector<8x128xf32> to vector<8x32xf32>
    %123 = arith.mulf %116, %101 : vector<8x32xf32>
    %124 = arith.mulf %115, %121 : vector<8x32xf32>
    %125 = arith.addf %123, %124 : vector<8x32xf32>
    %126 = math.tanh %125 : vector<8x32xf32>
    %127 = arith.mulf %122, %126 : vector<8x32xf32>
    %c88 = arith.constant 88 : index
    %c0_41 = arith.constant 0 : index
    %128 = vector.load %arg1[%c88, %c0_41] : memref<176x128xf32, #tpu.memory_space<vmem>>, vector<8x32xf32>
    %129 = arith.mulf %127, %128 : vector<8x32xf32>
    %130 = arith.addf %106, %129 : vector<8x32xf32>
    %c40 = arith.constant 40 : index
    %c0_42 = arith.constant 0 : index
    %131 = vector.load %arg3[%c40, %c0_42] : memref<120x128xf32, #tpu.memory_space<vmem>>, vector<8x128xf32>
    %cst_43 = arith.constant dense<0.000000e+00> : vector<8x128xf32>
    %132 = tpu.matmul %127, %1, %cst_43 {dimension_numbers = #tpu.dot_dimension_numbers<[1], [0], [0], [1], [0, 0, 1, 1], [], []>} : vector<8x32xf32>, vector<32x128xf32>, vector<8x128xf32> -> vector<8x128xf32>
    %133 = arith.addf %131, %132 : vector<8x128xf32>
    %134 = arith.negf %133 : vector<8x128xf32>
    %135 = math.exp %134 : vector<8x128xf32>
    %cst_44 = arith.constant 1.000000e+00 : f32
    %136 = vector.broadcast %cst_44 : f32 to vector<8x128xf32>
    %137 = arith.addf %136, %135 : vector<8x128xf32>
    %138 = arith.divf %136, %137 : vector<8x128xf32>
    %139 = vector.extract_strided_slice %138 {offsets = [0, 0], sizes = [8, 32], strides = [1, 1]} : vector<8x128xf32> to vector<8x32xf32>
    %140 = vector.extract_strided_slice %138 {offsets = [0, 32], sizes = [8, 32], strides = [1, 1]} : vector<8x128xf32> to vector<8x32xf32>
    %141 = vector.extract_strided_slice %138 {offsets = [0, 64], sizes = [8, 32], strides = [1, 1]} : vector<8x128xf32> to vector<8x32xf32>
    %cst_45 = arith.constant 2.000000e+00 : f32
    %142 = vector.broadcast %cst_45 : f32 to vector<8x32xf32>
    %143 = arith.mulf %142, %141 : vector<8x32xf32>
    %cst_46 = arith.constant 1.000000e+00 : f32
    %144 = vector.broadcast %cst_46 : f32 to vector<8x32xf32>
    %145 = arith.subf %143, %144 : vector<8x32xf32>
    %146 = vector.extract_strided_slice %138 {offsets = [0, 96], sizes = [8, 32], strides = [1, 1]} : vector<8x128xf32> to vector<8x32xf32>
    %147 = arith.mulf %140, %125 : vector<8x32xf32>
    %148 = arith.mulf %139, %145 : vector<8x32xf32>
    %149 = arith.addf %147, %148 : vector<8x32xf32>
    %150 = math.tanh %149 : vector<8x32xf32>
    %151 = arith.mulf %146, %150 : vector<8x32xf32>
    %c96 = arith.constant 96 : index
    %c0_47 = arith.constant 0 : index
    %152 = vector.load %arg1[%c96, %c0_47] : memref<176x128xf32, #tpu.memory_space<vmem>>, vector<8x32xf32>
    %153 = arith.mulf %151, %152 : vector<8x32xf32>
    %154 = arith.addf %130, %153 : vector<8x32xf32>
    %c48_48 = arith.constant 48 : index
    %c0_49 = arith.constant 0 : index
    %155 = vector.load %arg3[%c48_48, %c0_49] : memref<120x128xf32, #tpu.memory_space<vmem>>, vector<8x128xf32>
    %cst_50 = arith.constant dense<0.000000e+00> : vector<8x128xf32>
    %156 = tpu.matmul %151, %1, %cst_50 {dimension_numbers = #tpu.dot_dimension_numbers<[1], [0], [0], [1], [0, 0, 1, 1], [], []>} : vector<8x32xf32>, vector<32x128xf32>, vector<8x128xf32> -> vector<8x128xf32>
    %157 = arith.addf %155, %156 : vector<8x128xf32>
    %158 = arith.negf %157 : vector<8x128xf32>
    %159 = math.exp %158 : vector<8x128xf32>
    %cst_51 = arith.constant 1.000000e+00 : f32
    %160 = vector.broadcast %cst_51 : f32 to vector<8x128xf32>
    %161 = arith.addf %160, %159 : vector<8x128xf32>
    %162 = arith.divf %160, %161 : vector<8x128xf32>
    %163 = vector.extract_strided_slice %162 {offsets = [0, 0], sizes = [8, 32], strides = [1, 1]} : vector<8x128xf32> to vector<8x32xf32>
    %164 = vector.extract_strided_slice %162 {offsets = [0, 32], sizes = [8, 32], strides = [1, 1]} : vector<8x128xf32> to vector<8x32xf32>
    %165 = vector.extract_strided_slice %162 {offsets = [0, 64], sizes = [8, 32], strides = [1, 1]} : vector<8x128xf32> to vector<8x32xf32>
    %cst_52 = arith.constant 2.000000e+00 : f32
    %166 = vector.broadcast %cst_52 : f32 to vector<8x32xf32>
    %167 = arith.mulf %166, %165 : vector<8x32xf32>
    %cst_53 = arith.constant 1.000000e+00 : f32
    %168 = vector.broadcast %cst_53 : f32 to vector<8x32xf32>
    %169 = arith.subf %167, %168 : vector<8x32xf32>
    %170 = vector.extract_strided_slice %162 {offsets = [0, 96], sizes = [8, 32], strides = [1, 1]} : vector<8x128xf32> to vector<8x32xf32>
    %171 = arith.mulf %164, %149 : vector<8x32xf32>
    %172 = arith.mulf %163, %169 : vector<8x32xf32>
    %173 = arith.addf %171, %172 : vector<8x32xf32>
    %174 = math.tanh %173 : vector<8x32xf32>
    %175 = arith.mulf %170, %174 : vector<8x32xf32>
    %c104 = arith.constant 104 : index
    %c0_54 = arith.constant 0 : index
    %176 = vector.load %arg1[%c104, %c0_54] : memref<176x128xf32, #tpu.memory_space<vmem>>, vector<8x32xf32>
    %177 = arith.mulf %175, %176 : vector<8x32xf32>
    %178 = arith.addf %154, %177 : vector<8x32xf32>
    %c56_55 = arith.constant 56 : index
    %c0_56 = arith.constant 0 : index
    %179 = vector.load %arg3[%c56_55, %c0_56] : memref<120x128xf32, #tpu.memory_space<vmem>>, vector<8x128xf32>
    %cst_57 = arith.constant dense<0.000000e+00> : vector<8x128xf32>
    %180 = tpu.matmul %175, %1, %cst_57 {dimension_numbers = #tpu.dot_dimension_numbers<[1], [0], [0], [1], [0, 0, 1, 1], [], []>} : vector<8x32xf32>, vector<32x128xf32>, vector<8x128xf32> -> vector<8x128xf32>
    %181 = arith.addf %179, %180 : vector<8x128xf32>
    %182 = arith.negf %181 : vector<8x128xf32>
    %183 = math.exp %182 : vector<8x128xf32>
    %cst_58 = arith.constant 1.000000e+00 : f32
    %184 = vector.broadcast %cst_58 : f32 to vector<8x128xf32>
    %185 = arith.addf %184, %183 : vector<8x128xf32>
    %186 = arith.divf %184, %185 : vector<8x128xf32>
    %187 = vector.extract_strided_slice %186 {offsets = [0, 0], sizes = [8, 32], strides = [1, 1]} : vector<8x128xf32> to vector<8x32xf32>
    %188 = vector.extract_strided_slice %186 {offsets = [0, 32], sizes = [8, 32], strides = [1, 1]} : vector<8x128xf32> to vector<8x32xf32>
    %189 = vector.extract_strided_slice %186 {offsets = [0, 64], sizes = [8, 32], strides = [1, 1]} : vector<8x128xf32> to vector<8x32xf32>
    %cst_59 = arith.constant 2.000000e+00 : f32
    %190 = vector.broadcast %cst_59 : f32 to vector<8x32xf32>
    %191 = arith.mulf %190, %189 : vector<8x32xf32>
    %cst_60 = arith.constant 1.000000e+00 : f32
    %192 = vector.broadcast %cst_60 : f32 to vector<8x32xf32>
    %193 = arith.subf %191, %192 : vector<8x32xf32>
    %194 = vector.extract_strided_slice %186 {offsets = [0, 96], sizes = [8, 32], strides = [1, 1]} : vector<8x128xf32> to vector<8x32xf32>
    %195 = arith.mulf %188, %173 : vector<8x32xf32>
    %196 = arith.mulf %187, %193 : vector<8x32xf32>
    %197 = arith.addf %195, %196 : vector<8x32xf32>
    %198 = math.tanh %197 : vector<8x32xf32>
    %199 = arith.mulf %194, %198 : vector<8x32xf32>
    %c112 = arith.constant 112 : index
    %c0_61 = arith.constant 0 : index
    %200 = vector.load %arg1[%c112, %c0_61] : memref<176x128xf32, #tpu.memory_space<vmem>>, vector<8x32xf32>
    %201 = arith.mulf %199, %200 : vector<8x32xf32>
    %202 = arith.addf %178, %201 : vector<8x32xf32>
    %c64_62 = arith.constant 64 : index
    %c0_63 = arith.constant 0 : index
    %203 = vector.load %arg3[%c64_62, %c0_63] : memref<120x128xf32, #tpu.memory_space<vmem>>, vector<8x128xf32>
    %cst_64 = arith.constant dense<0.000000e+00> : vector<8x128xf32>
    %204 = tpu.matmul %199, %1, %cst_64 {dimension_numbers = #tpu.dot_dimension_numbers<[1], [0], [0], [1], [0, 0, 1, 1], [], []>} : vector<8x32xf32>, vector<32x128xf32>, vector<8x128xf32> -> vector<8x128xf32>
    %205 = arith.addf %203, %204 : vector<8x128xf32>
    %206 = arith.negf %205 : vector<8x128xf32>
    %207 = math.exp %206 : vector<8x128xf32>
    %cst_65 = arith.constant 1.000000e+00 : f32
    %208 = vector.broadcast %cst_65 : f32 to vector<8x128xf32>
    %209 = arith.addf %208, %207 : vector<8x128xf32>
    %210 = arith.divf %208, %209 : vector<8x128xf32>
    %211 = vector.extract_strided_slice %210 {offsets = [0, 0], sizes = [8, 32], strides = [1, 1]} : vector<8x128xf32> to vector<8x32xf32>
    %212 = vector.extract_strided_slice %210 {offsets = [0, 32], sizes = [8, 32], strides = [1, 1]} : vector<8x128xf32> to vector<8x32xf32>
    %213 = vector.extract_strided_slice %210 {offsets = [0, 64], sizes = [8, 32], strides = [1, 1]} : vector<8x128xf32> to vector<8x32xf32>
    %cst_66 = arith.constant 2.000000e+00 : f32
    %214 = vector.broadcast %cst_66 : f32 to vector<8x32xf32>
    %215 = arith.mulf %214, %213 : vector<8x32xf32>
    %cst_67 = arith.constant 1.000000e+00 : f32
    %216 = vector.broadcast %cst_67 : f32 to vector<8x32xf32>
    %217 = arith.subf %215, %216 : vector<8x32xf32>
    %218 = vector.extract_strided_slice %210 {offsets = [0, 96], sizes = [8, 32], strides = [1, 1]} : vector<8x128xf32> to vector<8x32xf32>
    %219 = arith.mulf %212, %197 : vector<8x32xf32>
    %220 = arith.mulf %211, %217 : vector<8x32xf32>
    %221 = arith.addf %219, %220 : vector<8x32xf32>
    %222 = math.tanh %221 : vector<8x32xf32>
    %223 = arith.mulf %218, %222 : vector<8x32xf32>
    %c120 = arith.constant 120 : index
    %c0_68 = arith.constant 0 : index
    %224 = vector.load %arg1[%c120, %c0_68] : memref<176x128xf32, #tpu.memory_space<vmem>>, vector<8x32xf32>
    %225 = arith.mulf %223, %224 : vector<8x32xf32>
    %226 = arith.addf %202, %225 : vector<8x32xf32>
    %c72_69 = arith.constant 72 : index
    %c0_70 = arith.constant 0 : index
    %227 = vector.load %arg3[%c72_69, %c0_70] : memref<120x128xf32, #tpu.memory_space<vmem>>, vector<8x128xf32>
    %cst_71 = arith.constant dense<0.000000e+00> : vector<8x128xf32>
    %228 = tpu.matmul %223, %1, %cst_71 {dimension_numbers = #tpu.dot_dimension_numbers<[1], [0], [0], [1], [0, 0, 1, 1], [], []>} : vector<8x32xf32>, vector<32x128xf32>, vector<8x128xf32> -> vector<8x128xf32>
    %229 = arith.addf %227, %228 : vector<8x128xf32>
    %230 = arith.negf %229 : vector<8x128xf32>
    %231 = math.exp %230 : vector<8x128xf32>
    %cst_72 = arith.constant 1.000000e+00 : f32
    %232 = vector.broadcast %cst_72 : f32 to vector<8x128xf32>
    %233 = arith.addf %232, %231 : vector<8x128xf32>
    %234 = arith.divf %232, %233 : vector<8x128xf32>
    %235 = vector.extract_strided_slice %234 {offsets = [0, 0], sizes = [8, 32], strides = [1, 1]} : vector<8x128xf32> to vector<8x32xf32>
    %236 = vector.extract_strided_slice %234 {offsets = [0, 32], sizes = [8, 32], strides = [1, 1]} : vector<8x128xf32> to vector<8x32xf32>
    %237 = vector.extract_strided_slice %234 {offsets = [0, 64], sizes = [8, 32], strides = [1, 1]} : vector<8x128xf32> to vector<8x32xf32>
    %cst_73 = arith.constant 2.000000e+00 : f32
    %238 = vector.broadcast %cst_73 : f32 to vector<8x32xf32>
    %239 = arith.mulf %238, %237 : vector<8x32xf32>
    %cst_74 = arith.constant 1.000000e+00 : f32
    %240 = vector.broadcast %cst_74 : f32 to vector<8x32xf32>
    %241 = arith.subf %239, %240 : vector<8x32xf32>
    %242 = vector.extract_strided_slice %234 {offsets = [0, 96], sizes = [8, 32], strides = [1, 1]} : vector<8x128xf32> to vector<8x32xf32>
    %243 = arith.mulf %236, %221 : vector<8x32xf32>
    %244 = arith.mulf %235, %241 : vector<8x32xf32>
    %245 = arith.addf %243, %244 : vector<8x32xf32>
    %246 = math.tanh %245 : vector<8x32xf32>
    %247 = arith.mulf %242, %246 : vector<8x32xf32>
    %c128 = arith.constant 128 : index
    %c0_75 = arith.constant 0 : index
    %248 = vector.load %arg1[%c128, %c0_75] : memref<176x128xf32, #tpu.memory_space<vmem>>, vector<8x32xf32>
    %249 = arith.mulf %247, %248 : vector<8x32xf32>
    %250 = arith.addf %226, %249 : vector<8x32xf32>
    %c80_76 = arith.constant 80 : index
    %c0_77 = arith.constant 0 : index
    %251 = vector.load %arg3[%c80_76, %c0_77] : memref<120x128xf32, #tpu.memory_space<vmem>>, vector<8x128xf32>
    %cst_78 = arith.constant dense<0.000000e+00> : vector<8x128xf32>
    %252 = tpu.matmul %247, %1, %cst_78 {dimension_numbers = #tpu.dot_dimension_numbers<[1], [0], [0], [1], [0, 0, 1, 1], [], []>} : vector<8x32xf32>, vector<32x128xf32>, vector<8x128xf32> -> vector<8x128xf32>
    %253 = arith.addf %251, %252 : vector<8x128xf32>
    %254 = arith.negf %253 : vector<8x128xf32>
    %255 = math.exp %254 : vector<8x128xf32>
    %cst_79 = arith.constant 1.000000e+00 : f32
    %256 = vector.broadcast %cst_79 : f32 to vector<8x128xf32>
    %257 = arith.addf %256, %255 : vector<8x128xf32>
    %258 = arith.divf %256, %257 : vector<8x128xf32>
    %259 = vector.extract_strided_slice %258 {offsets = [0, 0], sizes = [8, 32], strides = [1, 1]} : vector<8x128xf32> to vector<8x32xf32>
    %260 = vector.extract_strided_slice %258 {offsets = [0, 32], sizes = [8, 32], strides = [1, 1]} : vector<8x128xf32> to vector<8x32xf32>
    %261 = vector.extract_strided_slice %258 {offsets = [0, 64], sizes = [8, 32], strides = [1, 1]} : vector<8x128xf32> to vector<8x32xf32>
    %cst_80 = arith.constant 2.000000e+00 : f32
    %262 = vector.broadcast %cst_80 : f32 to vector<8x32xf32>
    %263 = arith.mulf %262, %261 : vector<8x32xf32>
    %cst_81 = arith.constant 1.000000e+00 : f32
    %264 = vector.broadcast %cst_81 : f32 to vector<8x32xf32>
    %265 = arith.subf %263, %264 : vector<8x32xf32>
    %266 = vector.extract_strided_slice %258 {offsets = [0, 96], sizes = [8, 32], strides = [1, 1]} : vector<8x128xf32> to vector<8x32xf32>
    %267 = arith.mulf %260, %245 : vector<8x32xf32>
    %268 = arith.mulf %259, %265 : vector<8x32xf32>
    %269 = arith.addf %267, %268 : vector<8x32xf32>
    %270 = math.tanh %269 : vector<8x32xf32>
    %271 = arith.mulf %266, %270 : vector<8x32xf32>
    %c136 = arith.constant 136 : index
    %c0_82 = arith.constant 0 : index
    %272 = vector.load %arg1[%c136, %c0_82] : memref<176x128xf32, #tpu.memory_space<vmem>>, vector<8x32xf32>
    %273 = arith.mulf %271, %272 : vector<8x32xf32>
    %274 = arith.addf %250, %273 : vector<8x32xf32>
    %c88_83 = arith.constant 88 : index
    %c0_84 = arith.constant 0 : index
    %275 = vector.load %arg3[%c88_83, %c0_84] : memref<120x128xf32, #tpu.memory_space<vmem>>, vector<8x128xf32>
    %cst_85 = arith.constant dense<0.000000e+00> : vector<8x128xf32>
    %276 = tpu.matmul %271, %1, %cst_85 {dimension_numbers = #tpu.dot_dimension_numbers<[1], [0], [0], [1], [0, 0, 1, 1], [], []>} : vector<8x32xf32>, vector<32x128xf32>, vector<8x128xf32> -> vector<8x128xf32>
    %277 = arith.addf %275, %276 : vector<8x128xf32>
    %278 = arith.negf %277 : vector<8x128xf32>
    %279 = math.exp %278 : vector<8x128xf32>
    %cst_86 = arith.constant 1.000000e+00 : f32
    %280 = vector.broadcast %cst_86 : f32 to vector<8x128xf32>
    %281 = arith.addf %280, %279 : vector<8x128xf32>
    %282 = arith.divf %280, %281 : vector<8x128xf32>
    %283 = vector.extract_strided_slice %282 {offsets = [0, 0], sizes = [8, 32], strides = [1, 1]} : vector<8x128xf32> to vector<8x32xf32>
    %284 = vector.extract_strided_slice %282 {offsets = [0, 32], sizes = [8, 32], strides = [1, 1]} : vector<8x128xf32> to vector<8x32xf32>
    %285 = vector.extract_strided_slice %282 {offsets = [0, 64], sizes = [8, 32], strides = [1, 1]} : vector<8x128xf32> to vector<8x32xf32>
    %cst_87 = arith.constant 2.000000e+00 : f32
    %286 = vector.broadcast %cst_87 : f32 to vector<8x32xf32>
    %287 = arith.mulf %286, %285 : vector<8x32xf32>
    %cst_88 = arith.constant 1.000000e+00 : f32
    %288 = vector.broadcast %cst_88 : f32 to vector<8x32xf32>
    %289 = arith.subf %287, %288 : vector<8x32xf32>
    %290 = vector.extract_strided_slice %282 {offsets = [0, 96], sizes = [8, 32], strides = [1, 1]} : vector<8x128xf32> to vector<8x32xf32>
    %291 = arith.mulf %284, %269 : vector<8x32xf32>
    %292 = arith.mulf %283, %289 : vector<8x32xf32>
    %293 = arith.addf %291, %292 : vector<8x32xf32>
    %294 = math.tanh %293 : vector<8x32xf32>
    %295 = arith.mulf %290, %294 : vector<8x32xf32>
    %c144 = arith.constant 144 : index
    %c0_89 = arith.constant 0 : index
    %296 = vector.load %arg1[%c144, %c0_89] : memref<176x128xf32, #tpu.memory_space<vmem>>, vector<8x32xf32>
    %297 = arith.mulf %295, %296 : vector<8x32xf32>
    %298 = arith.addf %274, %297 : vector<8x32xf32>
    %c96_90 = arith.constant 96 : index
    %c0_91 = arith.constant 0 : index
    %299 = vector.load %arg3[%c96_90, %c0_91] : memref<120x128xf32, #tpu.memory_space<vmem>>, vector<8x128xf32>
    %cst_92 = arith.constant dense<0.000000e+00> : vector<8x128xf32>
    %300 = tpu.matmul %295, %1, %cst_92 {dimension_numbers = #tpu.dot_dimension_numbers<[1], [0], [0], [1], [0, 0, 1, 1], [], []>} : vector<8x32xf32>, vector<32x128xf32>, vector<8x128xf32> -> vector<8x128xf32>
    %301 = arith.addf %299, %300 : vector<8x128xf32>
    %302 = arith.negf %301 : vector<8x128xf32>
    %303 = math.exp %302 : vector<8x128xf32>
    %cst_93 = arith.constant 1.000000e+00 : f32
    %304 = vector.broadcast %cst_93 : f32 to vector<8x128xf32>
    %305 = arith.addf %304, %303 : vector<8x128xf32>
    %306 = arith.divf %304, %305 : vector<8x128xf32>
    %307 = vector.extract_strided_slice %306 {offsets = [0, 0], sizes = [8, 32], strides = [1, 1]} : vector<8x128xf32> to vector<8x32xf32>
    %308 = vector.extract_strided_slice %306 {offsets = [0, 32], sizes = [8, 32], strides = [1, 1]} : vector<8x128xf32> to vector<8x32xf32>
    %309 = vector.extract_strided_slice %306 {offsets = [0, 64], sizes = [8, 32], strides = [1, 1]} : vector<8x128xf32> to vector<8x32xf32>
    %cst_94 = arith.constant 2.000000e+00 : f32
    %310 = vector.broadcast %cst_94 : f32 to vector<8x32xf32>
    %311 = arith.mulf %310, %309 : vector<8x32xf32>
    %cst_95 = arith.constant 1.000000e+00 : f32
    %312 = vector.broadcast %cst_95 : f32 to vector<8x32xf32>
    %313 = arith.subf %311, %312 : vector<8x32xf32>
    %314 = vector.extract_strided_slice %306 {offsets = [0, 96], sizes = [8, 32], strides = [1, 1]} : vector<8x128xf32> to vector<8x32xf32>
    %315 = arith.mulf %308, %293 : vector<8x32xf32>
    %316 = arith.mulf %307, %313 : vector<8x32xf32>
    %317 = arith.addf %315, %316 : vector<8x32xf32>
    %318 = math.tanh %317 : vector<8x32xf32>
    %319 = arith.mulf %314, %318 : vector<8x32xf32>
    %c152 = arith.constant 152 : index
    %c0_96 = arith.constant 0 : index
    %320 = vector.load %arg1[%c152, %c0_96] : memref<176x128xf32, #tpu.memory_space<vmem>>, vector<8x32xf32>
    %321 = arith.mulf %319, %320 : vector<8x32xf32>
    %322 = arith.addf %298, %321 : vector<8x32xf32>
    %c104_97 = arith.constant 104 : index
    %c0_98 = arith.constant 0 : index
    %323 = vector.load %arg3[%c104_97, %c0_98] : memref<120x128xf32, #tpu.memory_space<vmem>>, vector<8x128xf32>
    %cst_99 = arith.constant dense<0.000000e+00> : vector<8x128xf32>
    %324 = tpu.matmul %319, %1, %cst_99 {dimension_numbers = #tpu.dot_dimension_numbers<[1], [0], [0], [1], [0, 0, 1, 1], [], []>} : vector<8x32xf32>, vector<32x128xf32>, vector<8x128xf32> -> vector<8x128xf32>
    %325 = arith.addf %323, %324 : vector<8x128xf32>
    %326 = arith.negf %325 : vector<8x128xf32>
    %327 = math.exp %326 : vector<8x128xf32>
    %cst_100 = arith.constant 1.000000e+00 : f32
    %328 = vector.broadcast %cst_100 : f32 to vector<8x128xf32>
    %329 = arith.addf %328, %327 : vector<8x128xf32>
    %330 = arith.divf %328, %329 : vector<8x128xf32>
    %331 = vector.extract_strided_slice %330 {offsets = [0, 0], sizes = [8, 32], strides = [1, 1]} : vector<8x128xf32> to vector<8x32xf32>
    %332 = vector.extract_strided_slice %330 {offsets = [0, 32], sizes = [8, 32], strides = [1, 1]} : vector<8x128xf32> to vector<8x32xf32>
    %333 = vector.extract_strided_slice %330 {offsets = [0, 64], sizes = [8, 32], strides = [1, 1]} : vector<8x128xf32> to vector<8x32xf32>
    %cst_101 = arith.constant 2.000000e+00 : f32
    %334 = vector.broadcast %cst_101 : f32 to vector<8x32xf32>
    %335 = arith.mulf %334, %333 : vector<8x32xf32>
    %cst_102 = arith.constant 1.000000e+00 : f32
    %336 = vector.broadcast %cst_102 : f32 to vector<8x32xf32>
    %337 = arith.subf %335, %336 : vector<8x32xf32>
    %338 = vector.extract_strided_slice %330 {offsets = [0, 96], sizes = [8, 32], strides = [1, 1]} : vector<8x128xf32> to vector<8x32xf32>
    %339 = arith.mulf %332, %317 : vector<8x32xf32>
    %340 = arith.mulf %331, %337 : vector<8x32xf32>
    %341 = arith.addf %339, %340 : vector<8x32xf32>
    %342 = math.tanh %341 : vector<8x32xf32>
    %343 = arith.mulf %338, %342 : vector<8x32xf32>
    %c160 = arith.constant 160 : index
    %c0_103 = arith.constant 0 : index
    %344 = vector.load %arg1[%c160, %c0_103] : memref<176x128xf32, #tpu.memory_space<vmem>>, vector<8x32xf32>
    %345 = arith.mulf %343, %344 : vector<8x32xf32>
    %346 = arith.addf %322, %345 : vector<8x32xf32>
    %c112_104 = arith.constant 112 : index
    %c0_105 = arith.constant 0 : index
    %347 = vector.load %arg3[%c112_104, %c0_105] : memref<120x128xf32, #tpu.memory_space<vmem>>, vector<8x128xf32>
    %cst_106 = arith.constant dense<0.000000e+00> : vector<8x128xf32>
    %348 = tpu.matmul %343, %1, %cst_106 {dimension_numbers = #tpu.dot_dimension_numbers<[1], [0], [0], [1], [0, 0, 1, 1], [], []>} : vector<8x32xf32>, vector<32x128xf32>, vector<8x128xf32> -> vector<8x128xf32>
    %349 = arith.addf %347, %348 : vector<8x128xf32>
    %350 = arith.negf %349 : vector<8x128xf32>
    %351 = math.exp %350 : vector<8x128xf32>
    %cst_107 = arith.constant 1.000000e+00 : f32
    %352 = vector.broadcast %cst_107 : f32 to vector<8x128xf32>
    %353 = arith.addf %352, %351 : vector<8x128xf32>
    %354 = arith.divf %352, %353 : vector<8x128xf32>
    %355 = vector.extract_strided_slice %354 {offsets = [0, 0], sizes = [8, 32], strides = [1, 1]} : vector<8x128xf32> to vector<8x32xf32>
    %356 = vector.extract_strided_slice %354 {offsets = [0, 32], sizes = [8, 32], strides = [1, 1]} : vector<8x128xf32> to vector<8x32xf32>
    %357 = vector.extract_strided_slice %354 {offsets = [0, 64], sizes = [8, 32], strides = [1, 1]} : vector<8x128xf32> to vector<8x32xf32>
    %cst_108 = arith.constant 2.000000e+00 : f32
    %358 = vector.broadcast %cst_108 : f32 to vector<8x32xf32>
    %359 = arith.mulf %358, %357 : vector<8x32xf32>
    %cst_109 = arith.constant 1.000000e+00 : f32
    %360 = vector.broadcast %cst_109 : f32 to vector<8x32xf32>
    %361 = arith.subf %359, %360 : vector<8x32xf32>
    %362 = vector.extract_strided_slice %354 {offsets = [0, 96], sizes = [8, 32], strides = [1, 1]} : vector<8x128xf32> to vector<8x32xf32>
    %363 = arith.mulf %356, %341 : vector<8x32xf32>
    %364 = arith.mulf %355, %361 : vector<8x32xf32>
    %365 = arith.addf %363, %364 : vector<8x32xf32>
    %366 = math.tanh %365 : vector<8x32xf32>
    %367 = arith.mulf %362, %366 : vector<8x32xf32>
    %c168 = arith.constant 168 : index
    %c0_110 = arith.constant 0 : index
    %368 = vector.load %arg1[%c168, %c0_110] : memref<176x128xf32, #tpu.memory_space<vmem>>, vector<8x32xf32>
    %369 = arith.mulf %367, %368 : vector<8x32xf32>
    %370 = arith.addf %346, %369 : vector<8x32xf32>
    %cst_111 = arith.constant dense<0.000000e+00> : vector<8xf32>
    %371 = vector.multi_reduction <add>, %370, %cst_111 [1] : vector<8x32xf32> to vector<8xf32>
    %372 = vector.shape_cast %371 : vector<8xf32> to vector<8x1xf32>
    %c49 = arith.constant 49 : index
    %c0_112 = arith.constant 0 : index
    %373 = vector.load %arg1[%c49, %c0_112] : memref<176x128xf32, #tpu.memory_space<vmem>>, vector<1x1xf32>
    %374 = vector.extract %373[0, 0] : f32 from vector<1x1xf32>
    %375 = vector.broadcast %374 : f32 to vector<8x1xf32>
    %376 = arith.addf %372, %375 : vector<8x1xf32>
    %c0_113 = arith.constant 0 : index
    %c0_114 = arith.constant 0 : index
    %377 = vector.load %arg2[%c0_113, %c0_114] : memref<8x1xf32, #tpu.memory_space<vmem>>, vector<8x1xf32>
    tpu.vector_store %arg2[%c0_113, %c0_114], %376 {strides = array<i32>} : memref<8x1xf32, #tpu.memory_space<vmem>>, vector<8x1xf32>,
    return
  }
}

</mosaic_0001>

<bundles_post_ra>
// kernel: lstm_forward.1
= control target key start
LH: loop header
LB: loop body
LE: loop exit
PB: predicated region body
PF: predicated region fallthrough
CT: control target
= control target key end

     0   :  { %v2480_v0 = vmov 0.0|0.0   ;;  %vm2481_vm0 = vmmov 0   ;;  %v2482_v3 = vmov 0.0   ;;  %vm37_vm1 = vcmask 130048   ;;  %s2483_s24 = smov 64   ;;  %s2484_s25 = smov 32   ;;  %s2961_s1 = inlined_call_operand.vmem [shape: f32[176,128], index: 1, kind: input, shape index: {}]   ;;  %s2962_s0 = inlined_call_operand.vmem [shape: f32[120,16], index: 0, kind: input, shape index: {}]   ;;  %s2963_s2 = inlined_call_operand.vmem [shape: f32[8,1], index: 2, kind: output, shape index: {}]  }
   0x1   :  { %2255 = vmatprep.subr.bf16.mxu1 %v2480_v0  ;;  %v11_v1 = vld [vmem:[%s2961_s1] sm:$0xff]  ;;  %v12_v2 = vld [vmem:[%s2961_s1 + $0x8] sm:$0xff]  ;;  %2045 = vmatprep.mubr.msk.f32.mxu1 %vm2481_vm0, %v2482_v3  ;;  %v13_v5 = vld [vmem:[%s2961_s1 + $0x10] sm:$0xff]  ;;  %vm239_vm2 = vcmask 261120   ;;  %s2485_s28 = smov 96   ;;  %vm1883_vm3 = vcmask 7168  }
   0x2   :  { %v2256_v4 = vpack.c.bf16 %v12_v2, %v11_v1  ;;  %v14_v6 = vld [vmem:[%s2961_s1 + $0x18] sm:$0xff]  ;;  %2282 = vmatprep.subr.bf16.mxu0 %v2480_v0  ;;  %2142 = vmatprep.mubr.msk.f32.mxu0 %vm2481_vm0, %v2482_v3  ;;  %v18_v8 = vld [vmem:[%s2962_s0] sm:$0xff]  ;;  %v16_v10 = vld [vmem:[%s2961_s1 + $0x28] sm:$0xff] }
   0x3   :  { %v2519_v7 = vpack.c.bf16 %v14_v6, %v13_v5  ;;  %v15_v9 = vld [vmem:[%s2961_s1 + $0x20] sm:$0xff]  ;;  %v19_v12 = vld [vmem:[%s2962_s0 + $0x8] sm:$0xff]  ;;  %v20_v13 = vld [vmem:[%s2962_s0 + $0x10] sm:$0xff] }
   0x4   :  { %2257 = vmatpush3.bf16.msra.mxu1 %v2256_v4  ;;  %v2534_v11 = vpack.c.bf16 %v16_v10, %v15_v9  ;;  %v21_v14 = vld [vmem:[%s2962_s0 + $0x18] sm:$0xff]  ;;  %v22_v15 = vld [vmem:[%s2962_s0 + $0x20] sm:$0xff]  ;;  %v23_v16 = vld [vmem:[%s2962_s0 + $0x28] sm:$0xff] }
   0x5   :  { %2258 = vmatprep.subr.bf16.mxu1 %v2480_v0  ;;  %2284 = vmatpush3.bf16.msra.mxu0 %v2519_v7  ;;  %v24_v17 = vld [vmem:[%s2962_s0 + $0x30] sm:$0xff]  ;;  %v25_v18 = vld [vmem:[%s2962_s0 + $0x38] sm:$0xff]  ;;  %v26_v19 = vld [vmem:[%s2962_s0 + $0x40] sm:$0xff] }
   0x6   :  { %2285 = vmatprep.subr.bf16.mxu0 %v2480_v0  ;;  %v27_v20 = vld [vmem:[%s2962_s0 + $0x48] sm:$0xff]  ;;  %v28_v21 = vld [vmem:[%s2962_s0 + $0x50] sm:$0xff]  ;;  %v29_v22 = vld [vmem:[%s2962_s0 + $0x58] sm:$0xff] }
   0x7   :  { %2046 = vmatmul.mubr.msk.f32.vlgmr.msra.gmra.mrb[0].mxu1 %vm37_vm1, %v18_v8  ;;  %v30_v23 = vld [vmem:[%s2962_s0 + $0x60] sm:$0xff]  ;;  %v31_v24 = vld [vmem:[%s2962_s0 + $0x68] sm:$0xff]  ;;  %v32_v25 = vld [vmem:[%s2962_s0 + $0x70] sm:$0xff] }
   0x8   :  { %2260 = vmatpush3.bf16.msra.mxu1 %v2519_v7  ;;  %2048 = vmatprep.mubr.msk.f32.mxu1 %vm2481_vm0, %v2482_v3  ;;  %v2660_v48 = vld [vmem:[%s2961_s1 + $0x30] ss:$0 sm:$0xff] }
   0x9   :  { %2261 = vmatprep.subr.bf16.mxu1 %v2480_v0  ;;  %2287 = vmatpush3.bf16.msra.mxu0 %v2534_v11 }
   0xa   :  { %2288 = vmatprep.subr.bf16.mxu0 %v2480_v0 }
   0xb   :  { %2049 = vmatmul.mubr.msk.f32.gmra.mrb[2].mxu1 %vm37_vm1, %v19_v12 }
   0xc   :  { %2051 = vmatprep.mubr.msk.f32.mxu1 %vm2481_vm0, %v2482_v3  ;;  %2263 = vmatpush3.bf16.msra.mxu1 %v2534_v11 }
   0xd   :  { %2264 = vmatprep.subr.bf16.mxu1 %v2480_v0 }
   0xf   :  { %2052 = vmatmul.mubr.msk.f32.gmra.mrb[4].mxu1 %vm37_vm1, %v20_v13 }
  0x10   :  { %2054 = vmatprep.mubr.msk.f32.mxu1 %vm2481_vm0, %v2482_v3 }
  0x13   :  { %2055 = vmatmul.mubr.msk.f32.gmra.mrb[6].mxu1 %vm37_vm1, %v21_v14 }
  0x14   :  { %2057 = vmatprep.mubr.msk.f32.mxu1 %vm2481_vm0, %v2482_v3 }
  0x17   :  { %2058 = vmatmul.mubr.msk.f32.gmra.mrb[8].mxu1 %vm37_vm1, %v22_v15 }
  0x18   :  { %2060 = vmatprep.mubr.msk.f32.mxu1 %vm2481_vm0, %v2482_v3 }
  0x1b   :  { %2061 = vmatmul.mubr.msk.f32.gmra.mrb[10].mxu1 %vm37_vm1, %v23_v16 }
  0x1c   :  { %2063 = vmatprep.mubr.msk.f32.mxu1 %vm2481_vm0, %v2482_v3 }
  0x1f   :  { %2064 = vmatmul.mubr.msk.f32.gmra.mrb[12].mxu1 %vm37_vm1, %v24_v17 }
  0x20   :  { %2066 = vmatprep.mubr.msk.f32.mxu1 %vm2481_vm0, %v2482_v3 }
  0x23   :  { %2067 = vmatmul.mubr.msk.f32.gmra.mrb[14].mxu1 %vm37_vm1, %v25_v18 }
  0x24   :  { %2069 = vmatprep.mubr.msk.f32.mxu1 %vm2481_vm0, %v2482_v3 }
  0x27   :  { %2070 = vmatmul.mubr.msk.f32.gmra.mrb[16].mxu1 %vm37_vm1, %v26_v19 }
  0x28   :  { %2072 = vmatprep.mubr.msk.f32.mxu1 %vm2481_vm0, %v2482_v3 }
  0x2b   :  { %2073 = vmatmul.mubr.msk.f32.gmra.mrb[18].mxu1 %vm37_vm1, %v27_v20 }
  0x2c   :  { %2075 = vmatprep.mubr.msk.f32.mxu1 %vm2481_vm0, %v2482_v3 }
  0x2f   :  { %2076 = vmatmul.mubr.msk.f32.gmra.mrb[20].mxu1 %vm37_vm1, %v28_v21 }
  0x30   :  { %2078 = vmatprep.mubr.msk.f32.mxu1 %vm2481_vm0, %v2482_v3 }
  0x33   :  { %2079 = vmatmul.mubr.msk.f32.gmra.mrb[22].mxu1 %vm37_vm1, %v29_v22 }
  0x34   :  { %2081 = vmatprep.mubr.msk.f32.mxu1 %vm2481_vm0, %v2482_v3 }
  0x37   :  { %2082 = vmatmul.mubr.msk.f32.gmra.mrb[24].mxu1 %vm37_vm1, %v30_v23 }
  0x38   :  { %2084 = vmatprep.mubr.msk.f32.mxu1 %vm2481_vm0, %v2482_v3 }
  0x3b   :  { %2085 = vmatmul.mubr.msk.f32.gmra.mrb[26].mxu1 %vm37_vm1, %v31_v24 }
  0x3c   :  { %2087 = vmatprep.mubr.msk.f32.mxu1 %vm2481_vm0, %v2482_v3 }
  0x3f   :  { %2088 = vmatmul.mubr.msk.f32.gmra.mrb[28].mxu1 %vm37_vm1, %v32_v25 }
  0x40   :  { %2098 = vmatprep.mubr.msk.f32.mxu1 %vm2481_vm0, %v2482_v3 }
  0x43   :  { %2099 = vmatmul.mubr.f32.vlgmr.msra.gmra.mrb[0].mxu1 %v2482_v3 }
  0x44   :  { %2266 = vmatpush3.bf16.msra.mxu1 %v2519_v7  ;;  %2109 = vmatprep.mubr.msk.f32.mxu1 %vm2481_vm0, %v2482_v3 }
  0x45   :  { %2267 = vmatprep.subr.bf16.mxu1 %v2480_v0 }
  0x48   :  { %2269 = vmatpush3.bf16.msra.mxu1 %v2534_v11 }
  0x49   :  { %2270 = vmatprep.subr.bf16.mxu1 %v2480_v0 }
  0xea   :  { %v2635_v26 = vpop.f32.mrb[8].mxu1 }
  0xeb   :  { %v2059_v27 = vpop.f32.mrb[9].mxu1 }
  0xee   :  { %v2637_v28 = vpop.f32.mrb[10].mxu1 }
  0xef   :  { %v2062_v29 = vpop.f32.mrb[11].mxu1 }
  0xf2   :  { %v2639_v30 = vpop.f32.mrb[12].mxu1 }
  0xf3   :  { %v2065_v31 = vpop.f32.mrb[13].mxu1 }
  0xf6   :  { %v2641_v32 = vpop.f32.mrb[14].mxu1 }
  0xf7   :  { %v2068_v33 = vpop.f32.mrb[15].mxu1 }
  0xfa   :  { %v2643_v34 = vpop.f32.mrb[16].mxu1 }
  0xfb   :  { %v2071_v35 = vpop.f32.mrb[17].mxu1 }
  0xfe   :  { %v2645_v36 = vpop.f32.mrb[18].mxu1 }
  0xff   :  { %v2074_v37 = vpop.f32.mrb[19].mxu1 }
 0x102   :  { %v2647_v38 = vpop.f32.mrb[20].mxu1 }
 0x103   :  { %v2077_v39 = vpop.f32.mrb[21].mxu1 }
 0x106   :  { %v2649_v40 = vpop.f32.mrb[22].mxu1 }
 0x107   :  { %v2080_v41 = vpop.f32.mrb[23].mxu1 }
 0x10a   :  { %v2651_v42 = vpop.f32.mrb[24].mxu1 }
 0x10b   :  { %v2083_v43 = vpop.f32.mrb[25].mxu1 }
 0x10e   :  { %v2653_v44 = vpop.f32.mrb[26].mxu1 }
 0x10f   :  { %v2086_v45 = vpop.f32.mrb[27].mxu1 }
 0x112   :  { %v2655_v46 = vpop.f32.mrb[28].mxu1 }
 0x113   :  { %v2089_v47 = vpop.f32.mrb[29].mxu1 }
 0x116   :  { %v309_v49 = vpop.f32.mrb[0].mxu1 }
 0x117   :  { %v2348_v50 = vadd.f32 %v2660_v48, %v309_v49  ;;  %v2100_v51 = vpop.f32.mrb[1].mxu1 }
 0x119   :  { %v1905_v52 = vmul.f32 -1.442695, %v2348_v50 }
 0x11b   :  { %2390 = vpow2.f32 %v1905_v52 }
 0x125   :  { %v2391_v53 = vpop.eup %2390 }
 0x126   :  { %v317_v54 = vadd.f32 1.0, %v2391_v53 }
 0x128   :  { %2392 = vrcp.f32 %v317_v54 }
 0x132   :  { %v2393_v55 = vpop.eup %2392 }
 0x133   :  { %v320_v56 = vmul.f32 2.0, %v2393_v55  ;;  %v322_v60 = vmul.f32 0.0, %v2393_v55 }
 0x135   :  { %v1906_v57 = vadd.f32 -1.0, %v320_v56 }
 0x137   :  { %324 = vrot.lane.b32.xlu0 %v1906_v57, %s2483_s24 }
 0x1a9   :  { %v325_v58 = vpop.permute.xlu0 %324 }
 0x1aa   :  { %v327_v59 = vmul.f32 %v2393_v55, %v325_v58 }
 0x1ac   :  { %329 = vrot.lane.b32.xlu0 %v327_v59, %s2484_s25 }
 0x21e   :  { %v330_v61 = vpop.permute.xlu0 %329 }
 0x21f   :  { %v332_v62 = vadd.f32 %v330_v61, %v322_v60 }
 0x221   :  { %2394 = vtanh.f32 %v332_v62 }
 0x22b   :  { %v2395_v63 = vpop.eup %2394 }
 0x22c   :  { %335 = vrot.lane.b32.xlu1 %v2395_v63, %s2483_s24 }
 0x29e   :  { %v336_v1 = vpop.permute.xlu1 %335 }
 0x29f   :  { %v2666_v2 = vmul.f32 %v2393_v55, %v336_v1 }
 0x2a1   :  { %348 = vrot.lane.b32.xlu1 %v2666_v2, %s2484_s25 }
 0x313   :  { %v349_v4 = vpop.permute.xlu1 %348 }
 0x314   :  { %2110 = vmatmul.mubr.msk.f32.vlgmr.msra.gmra.mrb[2].mxu1 %vm239_vm2, %v349_v4 }
 0x315   :  { %2272 = vmatpush3.bf16.msra.mxu1 %v2519_v7  ;;  %2120 = vmatprep.mubr.msk.f32.mxu1 %vm2481_vm0, %v2482_v3 }
 0x316   :  { %2273 = vmatprep.subr.bf16.mxu1 %v2480_v0 }
 0x319   :  { %2275 = vmatpush3.bf16.msra.mxu1 %v2534_v11 }
 0x31a   :  { %2276 = vmatprep.subr.bf16.mxu1 %v2480_v0 }
 0x3e7   :  { %v418_v5 = vpop.f32.mrb[2].mxu1 }
 0x3e8   :  { %v2349_v6 = vadd.f32 %v2660_v48, %v418_v5  ;;  %v2111_v8 = vpop.f32.mrb[3].mxu1 }
 0x3ea   :  { %v1908_v9 = vmul.f32 -1.442695, %v2349_v6 }
 0x3ec   :  { %2396 = vpow2.f32 %v1908_v9 }
 0x3f6   :  { %v2397_v10 = vpop.eup %2396 }
 0x3f7   :  { %v426_v12 = vadd.f32 1.0, %v2397_v10 }
 0x3f9   :  { %2398 = vrcp.f32 %v426_v12 }
 0x403   :  { %v2399_v13 = vpop.eup %2398 }
 0x404   :  { %v429_v14 = vmul.f32 2.0, %v2399_v13  ;;  %v431_v18 = vmul.f32 %v2399_v13, %v332_v62 }
 0x406   :  { %v1909_v15 = vadd.f32 -1.0, %v429_v14  ;;  %v170_v14 = vadd.f32 %v2660_v48, %v2635_v26 }
 0x408   :  { %433 = vrot.lane.b32.xlu0 %v1909_v15, %s2483_s24 }
 0x47a   :  { %v434_v16 = vpop.permute.xlu0 %433 }
 0x47b   :  { %v436_v17 = vmul.f32 %v2399_v13, %v434_v16 }
 0x47d   :  { %438 = vrot.lane.b32.xlu1 %v436_v17, %s2484_s25 }
 0x4ef   :  { %v439_v19 = vpop.permute.xlu1 %438 }
 0x4f0   :  { %v441_v20 = vadd.f32 %v439_v19, %v431_v18 }
 0x4f2   :  { %2400 = vtanh.f32 %v441_v20 }
 0x4fc   :  { %v2401_v21 = vpop.eup %2400 }
 0x4fd   :  { %444 = vrot.lane.b32.xlu0 %v2401_v21, %s2483_s24 }
 0x56f   :  { %v445_v22 = vpop.permute.xlu0 %444 }
 0x570   :  { %v2681_v23 = vmul.f32 %v2399_v13, %v445_v22 }
 0x572   :  { %457 = vrot.lane.b32.xlu1 %v2681_v23, %s2484_s25 }
 0x5e4   :  { %v458_v24 = vpop.permute.xlu1 %457 }
 0x5e5   :  { %2121 = vmatmul.mubr.msk.f32.vlgmr.msra.gmra.mrb[4].mxu1 %vm239_vm2, %v458_v24 }
 0x5e6   :  { %2278 = vmatpush3.bf16.msra.mxu1 %v2519_v7  ;;  %2131 = vmatprep.mubr.msk.f32.mxu1 %vm2481_vm0, %v2482_v3 }
 0x5e7   :  { %2279 = vmatprep.subr.bf16.mxu1 %v2480_v0 }
 0x5ea   :  { %2281 = vmatpush3.bf16.msra.mxu1 %v2534_v11 }
 0x6b8   :  { %v527_v25 = vpop.f32.mrb[4].mxu1 }
 0x6b9   :  { %v2350_v27 = vadd.f32 %v2660_v48, %v527_v25  ;;  %v2122_v29 = vpop.f32.mrb[5].mxu1 }
 0x6bb   :  { %v1911_v31 = vmul.f32 -1.442695, %v2350_v27 }
 0x6bd   :  { %2402 = vpow2.f32 %v1911_v31 }
 0x6c7   :  { %v2403_v33 = vpop.eup %2402 }
 0x6c8   :  { %v535_v35 = vadd.f32 1.0, %v2403_v33 }
 0x6ca   :  { %2404 = vrcp.f32 %v535_v35 }
 0x6d4   :  { %v2405_v37 = vpop.eup %2404 }
 0x6d5   :  { %v538_v39 = vmul.f32 2.0, %v2405_v37  ;;  %v540_v47 = vmul.f32 %v2405_v37, %v441_v20 }
 0x6d7   :  { %v1912_v41 = vadd.f32 -1.0, %v538_v39 }
 0x6d9   :  { %542 = vrot.lane.b32.xlu0 %v1912_v41, %s2483_s24  ;;  %v175_v41 = vadd.f32 %v2660_v48, %v2637_v28 }
 0x74b   :  { %v543_v43 = vpop.permute.xlu0 %542 }
 0x74c   :  { %v545_v45 = vmul.f32 %v2405_v37, %v543_v43 }
 0x74e   :  { %547 = vrot.lane.b32.xlu1 %v545_v45, %s2484_s25 }
 0x7c0   :  { %v548_v49 = vpop.permute.xlu1 %547 }
 0x7c1   :  { %v550_v50 = vadd.f32 %v548_v49, %v540_v47 }
 0x7c3   :  { %2406 = vtanh.f32 %v550_v50 }
 0x7cd   :  { %v2407_v51 = vpop.eup %2406 }
 0x7ce   :  { %553 = vrot.lane.b32.xlu0 %v2407_v51, %s2483_s24 }
 0x840   :  { %v554_v52 = vpop.permute.xlu0 %553 }
 0x841   :  { %v2695_v53 = vmul.f32 %v2405_v37, %v554_v52 }
 0x843   :  { %566 = vrot.lane.b32.xlu1 %v2695_v53, %s2484_s25 }
 0x8b5   :  { %v567_v54 = vpop.permute.xlu1 %566 }
 0x8b6   :  { %2132 = vmatmul.mubr.msk.f32.vlgmr.msra.gmra.mrb[6].mxu1 %vm239_vm2, %v567_v54 }
 0x989   :  { %v636_v55 = vpop.f32.mrb[6].mxu1 }
 0x98a   :  { %v2351_v56 = vadd.f32 %v2660_v48, %v636_v55  ;;  %v2133_v57 = vpop.f32.mrb[7].mxu1 }
 0x98c   :  { %v1914_v58 = vmul.f32 -1.442695, %v2351_v56 }
 0x98e   :  { %2408 = vpow2.f32 %v1914_v58 }
 0x998   :  { %v2409_v59 = vpop.eup %2408 }
 0x999   :  { %v644_v60 = vadd.f32 1.0, %v2409_v59 }
 0x99b   :  { %2410 = vrcp.f32 %v644_v60 }
 0x9a5   :  { %v2411_v61 = vpop.eup %2410 }
 0x9a6   :  { %v647_v62 = vmul.f32 2.0, %v2411_v61  ;;  %v649_v5 = vmul.f32 %v2411_v61, %v550_v50 }
 0x9a8   :  { %v1915_v63 = vadd.f32 -1.0, %v647_v62 }
 0x9aa   :  { %651 = vrot.lane.b32.xlu0 %v1915_v63, %s2483_s24 }
 0xa1c   :  { %v652_v1 = vpop.permute.xlu0 %651 }
 0xa1d   :  { %v654_v4 = vmul.f32 %v2411_v61, %v652_v1  ;;  %v180_v1 = vadd.f32 %v2660_v48, %v2639_v30 }
 0xa1f   :  { %656 = vrot.lane.b32.xlu1 %v654_v4, %s2484_s25 }
 0xa91   :  { %v657_v6 = vpop.permute.xlu1 %656 }
 0xa92   :  { %v659_v8 = vadd.f32 %v657_v6, %v649_v5 }
 0xa94   :  { %2412 = vtanh.f32 %v659_v8 }
 0xa9e   :  { %v2413_v9 = vpop.eup %2412 }
 0xa9f   :  { %662 = vrot.lane.b32.xlu0 %v2413_v9, %s2483_s24 }
 0xb11   :  { %v663_v10 = vpop.permute.xlu0 %662 }
 0xb12   :  { %v2704_v12 = vmul.f32 %v2411_v61, %v663_v10 }
 0xb14   :  { %675 = vrot.lane.b32.xlu1 %v2704_v12, %s2484_s25 }
 0xb86   :  { %v676_v13 = vpop.permute.xlu1 %675 }
 0xb87   :  { %2143 = vmatmul.mubr.msk.f32.vlgmr.msra.gmra.mrb[0].mxu0 %vm239_vm2, %v676_v13 }
 0xb88   :  { %2290 = vmatpush3.bf16.msra.mxu0 %v2519_v7  ;;  %2153 = vmatprep.mubr.msk.f32.mxu0 %vm2481_vm0, %v2482_v3 }
 0xb89   :  { %2291 = vmatprep.subr.bf16.mxu0 %v2480_v0 }
 0xb8c   :  { %2293 = vmatpush3.bf16.msra.mxu0 %v2534_v11 }
 0xb8d   :  { %2294 = vmatprep.subr.bf16.mxu0 %v2480_v0 }
 0xc5a   :  { %v745_v15 = vpop.f32.mrb[0].mxu0 }
 0xc5b   :  { %v749_v16 = vadd.f32 %v745_v15, %v170_v14  ;;  %v2144_v17 = vpop.f32.mrb[1].mxu0 }
 0xc5d   :  { %v1917_v18 = vmul.f32 -1.442695, %v749_v16 }
 0xc5f   :  { %2414 = vpow2.f32 %v1917_v18 }
 0xc69   :  { %v2415_v19 = vpop.eup %2414 }
 0xc6a   :  { %v753_v20 = vadd.f32 1.0, %v2415_v19 }
 0xc6c   :  { %2416 = vrcp.f32 %v753_v20 }
 0xc76   :  { %v2417_v21 = vpop.eup %2416 }
 0xc77   :  { %v756_v22 = vmul.f32 2.0, %v2417_v21  ;;  %v758_v29 = vmul.f32 %v2417_v21, %v659_v8 }
 0xc79   :  { %v1918_v24 = vadd.f32 -1.0, %v756_v22 }
 0xc7b   :  { %760 = vrot.lane.b32.xlu0 %v1918_v24, %s2483_s24 }
 0xced   :  { %v761_v25 = vpop.permute.xlu0 %760 }
 0xcee   :  { %v763_v27 = vmul.f32 %v2417_v21, %v761_v25  ;;  %v185_v25 = vadd.f32 %v2660_v48, %v2641_v32 }
 0xcf0   :  { %765 = vrot.lane.b32.xlu1 %v763_v27, %s2484_s25 }
 0xd62   :  { %v766_v31 = vpop.permute.xlu1 %765 }
 0xd63   :  { %v768_v26 = vadd.f32 %v766_v31, %v758_v29 }
 0xd65   :  { %2418 = vtanh.f32 %v768_v26 }
 0xd6f   :  { %v2419_v33 = vpop.eup %2418 }
 0xd70   :  { %771 = vrot.lane.b32.xlu0 %v2419_v33, %s2483_s24 }
 0xde2   :  { %v772_v35 = vpop.permute.xlu0 %771 }
 0xde3   :  { %v2720_v37 = vmul.f32 %v2417_v21, %v772_v35 }
 0xde5   :  { %784 = vrot.lane.b32.xlu1 %v2720_v37, %s2484_s25 }
 0xe57   :  { %v785_v39 = vpop.permute.xlu1 %784 }
 0xe58   :  { %2154 = vmatmul.mubr.msk.f32.vlgmr.msra.gmra.mrb[2].mxu0 %vm239_vm2, %v785_v39 }
 0xe59   :  { %2296 = vmatpush3.bf16.msra.mxu0 %v2519_v7  ;;  %2164 = vmatprep.mubr.msk.f32.mxu0 %vm2481_vm0, %v2482_v3 }
 0xe5a   :  { %2297 = vmatprep.subr.bf16.mxu0 %v2480_v0 }
 0xe5d   :  { %2299 = vmatpush3.bf16.msra.mxu0 %v2534_v11 }
 0xe5e   :  { %2300 = vmatprep.subr.bf16.mxu0 %v2480_v0 }
 0xf2b   :  { %v854_v43 = vpop.f32.mrb[2].mxu0 }
 0xf2c   :  { %v858_v45 = vadd.f32 %v854_v43, %v175_v41  ;;  %v2155_v47 = vpop.f32.mrb[3].mxu0 }
 0xf2e   :  { %v1920_v49 = vmul.f32 -1.442695, %v858_v45 }
 0xf30   :  { %2420 = vpow2.f32 %v1920_v49 }
 0xf3a   :  { %v2421_v50 = vpop.eup %2420 }
 0xf3b   :  { %v862_v51 = vadd.f32 1.0, %v2421_v50 }
 0xf3d   :  { %2422 = vrcp.f32 %v862_v51 }
 0xf47   :  { %v2423_v52 = vpop.eup %2422 }
 0xf48   :  { %v865_v54 = vmul.f32 2.0, %v2423_v52  ;;  %v867_v58 = vmul.f32 %v2423_v52, %v768_v26 }
 0xf4a   :  { %v1921_v55 = vadd.f32 -1.0, %v865_v54 }
 0xf4c   :  { %869 = vrot.lane.b32.xlu0 %v1921_v55, %s2483_s24 }
 0xfbe   :  { %v870_v56 = vpop.permute.xlu0 %869 }
 0xfbf   :  { %v872_v57 = vmul.f32 %v2423_v52, %v870_v56  ;;  %v190_v56 = vadd.f32 %v2660_v48, %v2643_v34 }
 0xfc1   :  { %874 = vrot.lane.b32.xlu1 %v872_v57, %s2484_s25 }
0x1033   :  { %v875_v59 = vpop.permute.xlu1 %874 }
0x1034   :  { %v877_v28 = vadd.f32 %v875_v59, %v867_v58 }
0x1036   :  { %2424 = vtanh.f32 %v877_v28 }
0x1040   :  { %v2425_v60 = vpop.eup %2424 }
0x1041   :  { %880 = vrot.lane.b32.xlu0 %v2425_v60, %s2483_s24 }
0x10b3   :  { %v881_v61 = vpop.permute.xlu0 %880 }
0x10b4   :  { %v2736_v62 = vmul.f32 %v2423_v52, %v881_v61 }
0x10b6   :  { %893 = vrot.lane.b32.xlu1 %v2736_v62, %s2484_s25 }
0x1128   :  { %v894_v63 = vpop.permute.xlu1 %893 }
0x1129   :  { %2165 = vmatmul.mubr.msk.f32.vlgmr.msra.gmra.mrb[4].mxu0 %vm239_vm2, %v894_v63 }
0x112a   :  { %2302 = vmatpush3.bf16.msra.mxu0 %v2519_v7  ;;  %2175 = vmatprep.mubr.msk.f32.mxu0 %vm2481_vm0, %v2482_v3 }
0x112b   :  { %2303 = vmatprep.subr.bf16.mxu0 %v2480_v0 }
0x112e   :  { %2305 = vmatpush3.bf16.msra.mxu0 %v2534_v11 }
0x112f   :  { %2306 = vmatprep.subr.bf16.mxu0 %v2480_v0 }
0x11fc   :  { %v963_v4 = vpop.f32.mrb[4].mxu0 }
0x11fd   :  { %v967_v5 = vadd.f32 %v963_v4, %v180_v1  ;;  %v2166_v6 = vpop.f32.mrb[5].mxu0 }
0x11ff   :  { %v1923_v8 = vmul.f32 -1.442695, %v967_v5 }
0x1201   :  { %2426 = vpow2.f32 %v1923_v8 }
0x120b   :  { %v2427_v9 = vpop.eup %2426 }
0x120c   :  { %v971_v10 = vadd.f32 1.0, %v2427_v9 }
0x120e   :  { %2428 = vrcp.f32 %v971_v10 }
0x1218   :  { %v2429_v13 = vpop.eup %2428 }
0x1219   :  { %v974_v14 = vmul.f32 2.0, %v2429_v13  ;;  %v976_v18 = vmul.f32 %v2429_v13, %v877_v28 }
0x121b   :  { %v1924_v15 = vadd.f32 -1.0, %v974_v14 }
0x121d   :  { %978 = vrot.lane.b32.xlu0 %v1924_v15, %s2483_s24 }
0x128f   :  { %v979_v16 = vpop.permute.xlu0 %978 }
0x1290   :  { %v981_v17 = vmul.f32 %v2429_v13, %v979_v16  ;;  %v195_v16 = vadd.f32 %v2660_v48, %v2645_v36 }
0x1292   :  { %983 = vrot.lane.b32.xlu1 %v981_v17, %s2484_s25 }
0x1304   :  { %v984_v19 = vpop.permute.xlu1 %983 }
0x1305   :  { %v986_v30 = vadd.f32 %v984_v19, %v976_v18 }
0x1307   :  { %2430 = vtanh.f32 %v986_v30 }
0x1311   :  { %v2431_v20 = vpop.eup %2430 }
0x1312   :  { %989 = vrot.lane.b32.xlu0 %v2431_v20, %s2483_s24 }
0x1384   :  { %v990_v21 = vpop.permute.xlu0 %989 }
0x1385   :  { %v2752_v22 = vmul.f32 %v2429_v13, %v990_v21 }
0x1387   :  { %1002 = vrot.lane.b32.xlu1 %v2752_v22, %s2484_s25 }
0x13f9   :  { %v1003_v24 = vpop.permute.xlu1 %1002 }
0x13fa   :  { %2176 = vmatmul.mubr.msk.f32.vlgmr.msra.gmra.mrb[6].mxu0 %vm239_vm2, %v1003_v24 }
0x13fb   :  { %2308 = vmatpush3.bf16.msra.mxu0 %v2519_v7  ;;  %2186 = vmatprep.mubr.msk.f32.mxu0 %vm2481_vm0, %v2482_v3 }
0x13fc   :  { %2309 = vmatprep.subr.bf16.mxu0 %v2480_v0 }
0x13ff   :  { %2311 = vmatpush3.bf16.msra.mxu0 %v2534_v11 }
0x1400   :  { %2312 = vmatprep.subr.bf16.mxu0 %v2480_v0 }
0x14cd   :  { %v1072_v27 = vpop.f32.mrb[6].mxu0 }
0x14ce   :  { %v1076_v29 = vadd.f32 %v1072_v27, %v185_v25  ;;  %v2177_v31 = vpop.f32.mrb[7].mxu0 }
0x14d0   :  { %v1926_v26 = vmul.f32 -1.442695, %v1076_v29 }
0x14d2   :  { %2432 = vpow2.f32 %v1926_v26 }
0x14dc   :  { %v2433_v33 = vpop.eup %2432 }
0x14dd   :  { %v1080_v35 = vadd.f32 1.0, %v2433_v33 }
0x14df   :  { %2434 = vrcp.f32 %v1080_v35 }
0x14e9   :  { %v2435_v39 = vpop.eup %2434 }
0x14ea   :  { %v1083_v41 = vmul.f32 2.0, %v2435_v39  ;;  %v1085_v49 = vmul.f32 %v2435_v39, %v986_v30 }
0x14ec   :  { %v1927_v43 = vadd.f32 -1.0, %v1083_v41 }
0x14ee   :  { %1087 = vrot.lane.b32.xlu0 %v1927_v43, %s2483_s24 }
0x1560   :  { %v1088_v45 = vpop.permute.xlu0 %1087 }
0x1561   :  { %v1090_v47 = vmul.f32 %v2435_v39, %v1088_v45  ;;  %v200_v45 = vadd.f32 %v2660_v48, %v2647_v38 }
0x1563   :  { %1092 = vrot.lane.b32.xlu1 %v1090_v47, %s2484_s25 }
0x15d5   :  { %v1093_v50 = vpop.permute.xlu1 %1092 }
0x15d6   :  { %v1095_v32 = vadd.f32 %v1093_v50, %v1085_v49 }
0x15d8   :  { %2436 = vtanh.f32 %v1095_v32 }
0x15e2   :  { %v2437_v51 = vpop.eup %2436 }
0x15e3   :  { %1098 = vrot.lane.b32.xlu0 %v2437_v51, %s2483_s24 }
0x1655   :  { %v1099_v52 = vpop.permute.xlu0 %1098 }
0x1656   :  { %v2768_v54 = vmul.f32 %v2435_v39, %v1099_v52 }
0x1658   :  { %1111 = vrot.lane.b32.xlu1 %v2768_v54, %s2484_s25 }
0x16ca   :  { %v1112_v55 = vpop.permute.xlu1 %1111 }
0x16cb   :  { %2187 = vmatmul.mubr.msk.f32.vlgmr.msra.gmra.mrb[8].mxu0 %vm239_vm2, %v1112_v55 }
0x16cc   :  { %2314 = vmatpush3.bf16.msra.mxu0 %v2519_v7  ;;  %2197 = vmatprep.mubr.msk.f32.mxu0 %vm2481_vm0, %v2482_v3 }
0x16cd   :  { %2315 = vmatprep.subr.bf16.mxu0 %v2480_v0 }
0x16d0   :  { %2317 = vmatpush3.bf16.msra.mxu0 %v2534_v11 }
0x16d1   :  { %2318 = vmatprep.subr.bf16.mxu0 %v2480_v0 }
0x179e   :  { %v1181_v57 = vpop.f32.mrb[8].mxu0 }
0x179f   :  { %v1185_v58 = vadd.f32 %v1181_v57, %v190_v56  ;;  %v2188_v59 = vpop.f32.mrb[9].mxu0 }
0x17a1   :  { %v1929_v28 = vmul.f32 -1.442695, %v1185_v58 }
0x17a3   :  { %2438 = vpow2.f32 %v1929_v28 }
0x17ad   :  { %v2439_v60 = vpop.eup %2438 }
0x17ae   :  { %v1189_v61 = vadd.f32 1.0, %v2439_v60 }
0x17b0   :  { %2440 = vrcp.f32 %v1189_v61 }
0x17ba   :  { %v2441_v63 = vpop.eup %2440 }
0x17bb   :  { %v1192_v1 = vmul.f32 2.0, %v2441_v63  ;;  %v1194_v8 = vmul.f32 %v2441_v63, %v1095_v32 }
0x17bd   :  { %v1930_v4 = vadd.f32 -1.0, %v1192_v1 }
0x17bf   :  { %1196 = vrot.lane.b32.xlu0 %v1930_v4, %s2483_s24 }
0x1831   :  { %v1197_v5 = vpop.permute.xlu0 %1196 }
0x1832   :  { %v1199_v6 = vmul.f32 %v2441_v63, %v1197_v5  ;;  %v205_v5 = vadd.f32 %v2660_v48, %v2649_v40 }
0x1834   :  { %1201 = vrot.lane.b32.xlu1 %v1199_v6, %s2484_s25 }
0x18a6   :  { %v1202_v9 = vpop.permute.xlu1 %1201 }
0x18a7   :  { %v1204_v34 = vadd.f32 %v1202_v9, %v1194_v8 }
0x18a9   :  { %2442 = vtanh.f32 %v1204_v34 }
0x18b3   :  { %v2443_v10 = vpop.eup %2442 }
0x18b4   :  { %1207 = vrot.lane.b32.xlu0 %v2443_v10, %s2483_s24 }
0x1926   :  { %v1208_v13 = vpop.permute.xlu0 %1207 }
0x1927   :  { %v2784_v14 = vmul.f32 %v2441_v63, %v1208_v13 }
0x1929   :  { %1220 = vrot.lane.b32.xlu1 %v2784_v14, %s2484_s25 }
0x199b   :  { %v1221_v15 = vpop.permute.xlu1 %1220 }
0x199c   :  { %2198 = vmatmul.mubr.msk.f32.vlgmr.msra.gmra.mrb[10].mxu0 %vm239_vm2, %v1221_v15 }
0x199d   :  { %2320 = vmatpush3.bf16.msra.mxu0 %v2519_v7  ;;  %2208 = vmatprep.mubr.msk.f32.mxu0 %vm2481_vm0, %v2482_v3 }
0x199e   :  { %2321 = vmatprep.subr.bf16.mxu0 %v2480_v0 }
0x19a1   :  { %2323 = vmatpush3.bf16.msra.mxu0 %v2534_v11 }
0x19a2   :  { %2324 = vmatprep.subr.bf16.mxu0 %v2480_v0 }
0x1a6f   :  { %v1290_v17 = vpop.f32.mrb[10].mxu0 }
0x1a70   :  { %v1294_v18 = vadd.f32 %v1290_v17, %v195_v16  ;;  %v2199_v19 = vpop.f32.mrb[11].mxu0 }
0x1a72   :  { %v1932_v30 = vmul.f32 -1.442695, %v1294_v18 }
0x1a74   :  { %2444 = vpow2.f32 %v1932_v30 }
0x1a7e   :  { %v2445_v20 = vpop.eup %2444 }
0x1a7f   :  { %v1298_v21 = vadd.f32 1.0, %v2445_v20 }
0x1a81   :  { %2446 = vrcp.f32 %v1298_v21 }
0x1a8b   :  { %v2447_v24 = vpop.eup %2446 }
0x1a8c   :  { %v1301_v25 = vmul.f32 2.0, %v2447_v24  ;;  %v1303_v26 = vmul.f32 %v2447_v24, %v1204_v34 }
0x1a8e   :  { %v1933_v27 = vadd.f32 -1.0, %v1301_v25 }
0x1a90   :  { %1305 = vrot.lane.b32.xlu0 %v1933_v27, %s2483_s24 }
0x1b02   :  { %v1306_v29 = vpop.permute.xlu0 %1305 }
0x1b03   :  { %v1308_v31 = vmul.f32 %v2447_v24, %v1306_v29  ;;  %v210_v29 = vadd.f32 %v2660_v48, %v2651_v42 }
0x1b05   :  { %1310 = vrot.lane.b32.xlu1 %v1308_v31, %s2484_s25 }
0x1b77   :  { %v1311_v33 = vpop.permute.xlu1 %1310 }
0x1b78   :  { %v1313_v36 = vadd.f32 %v1311_v33, %v1303_v26 }
0x1b7a   :  { %2448 = vtanh.f32 %v1313_v36 }
0x1b84   :  { %v2449_v35 = vpop.eup %2448 }
0x1b85   :  { %1316 = vrot.lane.b32.xlu0 %v2449_v35, %s2483_s24 }
0x1bf7   :  { %v1317_v39 = vpop.permute.xlu0 %1316 }
0x1bf8   :  { %v2800_v41 = vmul.f32 %v2447_v24, %v1317_v39 }
0x1bfa   :  { %1329 = vrot.lane.b32.xlu1 %v2800_v41, %s2484_s25 }
0x1c6c   :  { %v1330_v43 = vpop.permute.xlu1 %1329 }
0x1c6d   :  { %2209 = vmatmul.mubr.msk.f32.vlgmr.msra.gmra.mrb[12].mxu0 %vm239_vm2, %v1330_v43 }
0x1c6e   :  { %2326 = vmatpush3.bf16.msra.mxu0 %v2519_v7  ;;  %2219 = vmatprep.mubr.msk.f32.mxu0 %vm2481_vm0, %v2482_v3 }
0x1c6f   :  { %2327 = vmatprep.subr.bf16.mxu0 %v2480_v0 }
0x1c72   :  { %2329 = vmatpush3.bf16.msra.mxu0 %v2534_v11 }
0x1c73   :  { %2330 = vmatprep.subr.bf16.mxu0 %v2480_v0 }
0x1d40   :  { %v1399_v47 = vpop.f32.mrb[12].mxu0 }
0x1d41   :  { %v1403_v49 = vadd.f32 %v1399_v47, %v200_v45  ;;  %v2210_v50 = vpop.f32.mrb[13].mxu0 }
0x1d43   :  { %v1935_v32 = vmul.f32 -1.442695, %v1403_v49 }
0x1d45   :  { %2450 = vpow2.f32 %v1935_v32 }
0x1d4f   :  { %v2451_v51 = vpop.eup %2450 }
0x1d50   :  { %v1407_v52 = vadd.f32 1.0, %v2451_v51 }
0x1d52   :  { %2452 = vrcp.f32 %v1407_v52 }
0x1d5c   :  { %v2453_v55 = vpop.eup %2452 }
0x1d5d   :  { %v1410_v56 = vmul.f32 2.0, %v2453_v55  ;;  %v1412_v28 = vmul.f32 %v2453_v55, %v1313_v36 }
0x1d5f   :  { %v1936_v57 = vadd.f32 -1.0, %v1410_v56 }
0x1d61   :  { %1414 = vrot.lane.b32.xlu0 %v1936_v57, %s2483_s24 }
0x1dd3   :  { %v1415_v58 = vpop.permute.xlu0 %1414 }
0x1dd4   :  { %v1417_v59 = vmul.f32 %v2453_v55, %v1415_v58  ;;  %v215_v58 = vadd.f32 %v2660_v48, %v2653_v44 }
0x1dd6   :  { %1419 = vrot.lane.b32.xlu1 %v1417_v59, %s2484_s25 }
0x1e48   :  { %v1420_v60 = vpop.permute.xlu1 %1419 }
0x1e49   :  { %v1422_v38 = vadd.f32 %v1420_v60, %v1412_v28 }
0x1e4b   :  { %2454 = vtanh.f32 %v1422_v38 }
0x1e55   :  { %v2455_v61 = vpop.eup %2454 }
0x1e56   :  { %1425 = vrot.lane.b32.xlu0 %v2455_v61, %s2483_s24 }
0x1ec8   :  { %v1426_v63 = vpop.permute.xlu0 %1425 }
0x1ec9   :  { %v2816_v1 = vmul.f32 %v2453_v55, %v1426_v63 }
0x1ecb   :  { %1438 = vrot.lane.b32.xlu1 %v2816_v1, %s2484_s25 }
0x1f3d   :  { %v1439_v4 = vpop.permute.xlu1 %1438 }
0x1f3e   :  { %2220 = vmatmul.mubr.msk.f32.vlgmr.msra.gmra.mrb[14].mxu0 %vm239_vm2, %v1439_v4 }
0x1f3f   :  { %2332 = vmatpush3.bf16.msra.mxu0 %v2519_v7  ;;  %2230 = vmatprep.mubr.msk.f32.mxu0 %vm2481_vm0, %v2482_v3 }
0x1f40   :  { %2333 = vmatprep.subr.bf16.mxu0 %v2480_v0 }
0x1f43   :  { %2335 = vmatpush3.bf16.msra.mxu0 %v2534_v11 }
0x1f44   :  { %2336 = vmatprep.subr.bf16.mxu0 %v2480_v0 }
0x2011   :  { %v1508_v6 = vpop.f32.mrb[14].mxu0 }
0x2012   :  { %v1512_v8 = vadd.f32 %v1508_v6, %v205_v5  ;;  %v2221_v9 = vpop.f32.mrb[15].mxu0 }
0x2014   :  { %v1938_v34 = vmul.f32 -1.442695, %v1512_v8 }
0x2016   :  { %2456 = vpow2.f32 %v1938_v34 }
0x2020   :  { %v2457_v10 = vpop.eup %2456 }
0x2021   :  { %v1516_v13 = vadd.f32 1.0, %v2457_v10 }
0x2023   :  { %2458 = vrcp.f32 %v1516_v13  ;;  %v220_v13 = vadd.f32 %v2660_v48, %v2655_v46  ;;  %v557_v46 = vld [vmem:[%s2961_s1 + $0x48] sm:$0xff]  ;;  %v775_v48 = vld [vmem:[%s2961_s1 + $0x58] sm:$0xff] }
0x202d   :  { %v2459_v15 = vpop.eup %2458 }
0x202e   :  { %v1519_v16 = vmul.f32 2.0, %v2459_v15  ;;  %v1521_v30 = vmul.f32 %v2459_v15, %v1422_v38 }
0x2030   :  { %v1939_v17 = vadd.f32 -1.0, %v1519_v16 }
0x2032   :  { %1523 = vrot.lane.b32.xlu0 %v1939_v17, %s2483_s24 }
0x20a4   :  { %v1524_v18 = vpop.permute.xlu0 %1523 }
0x20a5   :  { %v1526_v19 = vmul.f32 %v2459_v15, %v1524_v18 }
0x20a7   :  { %1528 = vrot.lane.b32.xlu1 %v1526_v19, %s2484_s25 }
0x2119   :  { %v1529_v20 = vpop.permute.xlu1 %1528 }
0x211a   :  { %v1531_v40 = vadd.f32 %v1529_v20, %v1521_v30 }
0x211c   :  { %2460 = vtanh.f32 %v1531_v40 }
0x2126   :  { %v2461_v21 = vpop.eup %2460 }
0x2127   :  { %1534 = vrot.lane.b32.xlu0 %v2461_v21, %s2483_s24 }
0x2199   :  { %v1535_v24 = vpop.permute.xlu0 %1534 }
0x219a   :  { %v2832_v25 = vmul.f32 %v2459_v15, %v1535_v24  ;;  %v339_v24 = vld [vmem:[%s2961_s1 + $0x38] sm:$0xff] }
0x219c   :  { %1547 = vrot.lane.b32.xlu1 %v2832_v25, %s2484_s25 }
0x220e   :  { %v1548_v27 = vpop.permute.xlu1 %1547 }
0x220f   :  { %2231 = vmatmul.mubr.msk.f32.vlgmr.msra.gmra.mrb[16].mxu0 %vm239_vm2, %v1548_v27  ;;  %v993_v27 = vld [vmem:[%s2961_s1 + $0x68] sm:$0xff] }
0x2210   :  { %2338 = vmatpush3.bf16.msra.mxu0 %v2519_v7  ;;  %2241 = vmatprep.mubr.msk.f32.mxu0 %vm2481_vm0, %v2482_v3 }
0x2211   :  { %2339 = vmatprep.subr.bf16.mxu0 %v2480_v0 }
0x2214   :  { %2341 = vmatpush3.bf16.msra.mxu0 %v2534_v11 }
0x2215   :  { %2342 = vmatprep.subr.bf16.mxu0 %v2480_v0 }
0x22e2   :  { %v1617_v31 = vpop.f32.mrb[16].mxu0 }
0x22e3   :  { %v1621_v26 = vadd.f32 %v1617_v31, %v210_v29  ;;  %v2232_v33 = vpop.f32.mrb[17].mxu0  ;;  %v1211_v29 = vld [vmem:[%s2961_s1 + $0x78] sm:$0xff]  ;;  %v1429_v31 = vld [vmem:[%s2961_s1 + $0x88] sm:$0xff] }
0x22e5   :  { %v1941_v36 = vmul.f32 -1.442695, %v1621_v26  ;;  %v1647_v26 = vld [vmem:[%s2961_s1 + $0x98] sm:$0xff] }
0x22e7   :  { %2462 = vpow2.f32 %v1941_v36 }
0x22f1   :  { %v2463_v35 = vpop.eup %2462 }
0x22f2   :  { %v1625_v39 = vadd.f32 1.0, %v2463_v35  ;;  %v448_v35 = vld [vmem:[%s2961_s1 + $0x40] sm:$0xff] }
0x22f4   :  { %2464 = vrcp.f32 %v1625_v39  ;;  %v666_v39 = vld [vmem:[%s2961_s1 + $0x50] sm:$0xff] }
0x22fe   :  { %v2465_v43 = vpop.eup %2464 }
0x22ff   :  { %v1628_v45 = vmul.f32 2.0, %v2465_v43  ;;  %v1630_v32 = vmul.f32 %v2465_v43, %v1531_v40 }
0x2301   :  { %v1942_v47 = vadd.f32 -1.0, %v1628_v45  ;;  %v1102_v45 = vld [vmem:[%s2961_s1 + $0x70] sm:$0xff] }
0x2303   :  { %1632 = vrot.lane.b32.xlu0 %v1942_v47, %s2483_s24  ;;  %v1320_v47 = vld [vmem:[%s2961_s1 + $0x80] sm:$0xff] }
0x2375   :  { %v1633_v49 = vpop.permute.xlu0 %1632 }
0x2376   :  { %v1635_v50 = vmul.f32 %v2465_v43, %v1633_v49  ;;  %v1538_v49 = vld [vmem:[%s2961_s1 + $0x90] sm:$0xff] }
0x2378   :  { %1637 = vrot.lane.b32.xlu1 %v1635_v50, %s2484_s25  ;;  %v1756_v50 = vld [vmem:[%s2961_s1 + $0xa0] sm:$0xff] }
0x23ea   :  { %v1638_v51 = vpop.permute.xlu1 %1637 }
0x23eb   :  { %v1640_v42 = vadd.f32 %v1638_v51, %v1630_v32  ;;  %v1865_v32 = vld [vmem:[%s2961_s1 + $0xa8] sm:$0xff] }
0x23ed   :  { %2466 = vtanh.f32 %v1640_v42 }
0x23f7   :  { %v2467_v52 = vpop.eup %2466 }
0x23f8   :  { %1643 = vrot.lane.b32.xlu0 %v2467_v52, %s2483_s24 }
0x246a   :  { %v1644_v55 = vpop.permute.xlu0 %1643 }
0x246b   :  { %v2848_v56 = vmul.f32 %v2465_v43, %v1644_v55  ;;  %v884_v43 = vld [vmem:[%s2961_s1 + $0x60] sm:$0xff] }
0x246d   :  { %1656 = vrot.lane.b32.xlu1 %v2848_v56, %s2484_s25 }
0x24df   :  { %v1657_v57 = vpop.permute.xlu1 %1656 }
0x24e0   :  { %2242 = vmatmul.mubr.msk.f32.vlgmr.msra.gmra.mrb[18].mxu0 %vm239_vm2, %v1657_v57 }
0x24e1   :  { %2344 = vmatpush3.bf16.msra.mxu0 %v2519_v7  ;;  %2252 = vmatprep.mubr.msk.f32.mxu0 %vm2481_vm0, %v2482_v3 }
0x24e2   :  { %2345 = vmatprep.subr.bf16.mxu0 %v2480_v0 }
0x24e5   :  { %2347 = vmatpush3.bf16.msra.mxu0 %v2534_v11 }
0x25b3   :  { %v1726_v59 = vpop.f32.mrb[18].mxu0 }
0x25b4   :  { %v1730_v28 = vadd.f32 %v1726_v59, %v215_v58  ;;  %v2243_v60 = vpop.f32.mrb[19].mxu0 }
0x25b6   :  { %v1944_v38 = vmul.f32 -1.442695, %v1730_v28 }
0x25b8   :  { %2468 = vpow2.f32 %v1944_v38 }
0x25c2   :  { %v2469_v61 = vpop.eup %2468 }
0x25c3   :  { %v1734_v63 = vadd.f32 1.0, %v2469_v61 }
0x25c5   :  { %2470 = vrcp.f32 %v1734_v63 }
0x25cf   :  { %v2471_v4 = vpop.eup %2470 }
0x25d0   :  { %v1737_v7 = vmul.f32 2.0, %v2471_v4  ;;  %v1739_v11 = vmul.f32 %v2471_v4, %v1640_v42 }
0x25d2   :  { %v1945_v5 = vadd.f32 -1.0, %v1737_v7 }
0x25d4   :  { %1741 = vrot.lane.b32.xlu0 %v1945_v5, %s2483_s24 }
0x2646   :  { %v1742_v3 = vpop.permute.xlu0 %1741 }
0x2647   :  { %v1744_v0 = vmul.f32 %v2471_v4, %v1742_v3 }
0x2649   :  { %1746 = vrot.lane.b32.xlu1 %v1744_v0, %s2484_s25 }
0x26bb   :  { %v1747_v6 = vpop.permute.xlu1 %1746 }
0x26bc   :  { %v1749_v44 = vadd.f32 %v1747_v6, %v1739_v11 }
0x26be   :  { %2472 = vtanh.f32 %v1749_v44 }
0x26c8   :  { %v2473_v8 = vpop.eup %2472 }
0x26c9   :  { %1752 = vrot.lane.b32.xlu0 %v2473_v8, %s2483_s24 }
0x273b   :  { %v1753_v9 = vpop.permute.xlu0 %1752 }
0x273c   :  { %v2863_v34 = vmul.f32 %v2471_v4, %v1753_v9 }
0x273e   :  { %1765 = vrot.lane.b32.xlu1 %v2863_v34, %s2484_s25 }
0x27b0   :  { %v1766_v10 = vpop.permute.xlu1 %1765 }
0x27b1   :  { %2253 = vmatmul.mubr.msk.f32.vlgmr.msra.gmra.mrb[20].mxu0 %vm239_vm2, %v1766_v10 }
0x2884   :  { %v1835_v15 = vpop.f32.mrb[20].mxu0 }
0x2885   :  { %v1839_v16 = vadd.f32 %v1835_v15, %v220_v13  ;;  %v2254_v17 = vpop.f32.mrb[21].mxu0 }
0x2887   :  { %v1947_v18 = vmul.f32 -1.442695, %v1839_v16 }
0x2889   :  { %2474 = vpow2.f32 %v1947_v18 }
0x2893   :  { %v2475_v19 = vpop.eup %2474 }
0x2894   :  { %v1843_v30 = vadd.f32 1.0, %v2475_v19 }
0x2896   :  { %2476 = vrcp.f32 %v1843_v30 }
0x28a0   :  { %v2870_v20 = vpop.eup %2476 }
0x28a1   :  { %v1846_v40 = vmul.f32 2.0, %v2870_v20  ;;  %v1848_v51 = vmul.f32 %v2870_v20, %v1749_v44 }
0x28a3   :  { %v1948_v21 = vadd.f32 -1.0, %v1846_v40 }
0x28a5   :  { %1850 = vrot.lane.b32.xlu0 %v1948_v21, %s2483_s24 }
0x28a9   :  { %341 = vrot.lane.b32.xlu0 %v339_v24, %s2485_s28 }
0x28ad   :  { %559 = vrot.lane.b32.xlu0 %v557_v46, %s2485_s28 }
0x28b1   :  { %777 = vrot.lane.b32.xlu0 %v775_v48, %s2485_s28 }
0x28b5   :  { %995 = vrot.lane.b32.xlu0 %v993_v27, %s2485_s28 }
0x28b9   :  { %1213 = vrot.lane.b32.xlu0 %v1211_v29, %s2485_s28 }
0x28bd   :  { %1431 = vrot.lane.b32.xlu0 %v1429_v31, %s2485_s28 }
0x28c1   :  { %1649 = vrot.lane.b32.xlu0 %v1647_v26, %s2485_s28 }
0x2917   :  { %v1851_v33 = vpop.permute.xlu0 %1850 }
0x2918   :  { %v1853_v36 = vmul.f32 %v2870_v20, %v1851_v33 }
0x291a   :  { %1855 = vrot.lane.b32.xlu1 %v1853_v36, %s2484_s25 }
0x291b   :  { %v342_v57 = vpop.permute.xlu0 %341 }
0x291c   :  { %v344_v28 = vmul.f32 %v342_v57, %v2666_v2 }
0x291e   :  { %450 = vrot.lane.b32.xlu1 %v448_v35, %s2485_s28 }
0x291f   :  { %v560_v60 = vpop.permute.xlu0 %559 }
0x2920   :  { %v562_v63 = vmul.f32 %v560_v60, %v2695_v53 }
0x2922   :  { %668 = vrot.lane.b32.xlu1 %v666_v39, %s2485_s28 }
0x2923   :  { %v778_v5 = vpop.permute.xlu0 %777 }
0x2924   :  { %v780_v11 = vmul.f32 %v778_v5, %v2720_v37 }
0x2926   :  { %886 = vrot.lane.b32.xlu1 %v884_v43, %s2485_s28 }
0x2927   :  { %v996_v8 = vpop.permute.xlu0 %995 }
0x2928   :  { %v998_v2 = vmul.f32 %v996_v8, %v2752_v22 }
0x292a   :  { %1104 = vrot.lane.b32.xlu1 %v1102_v45, %s2485_s28 }
0x292b   :  { %v1214_v53 = vpop.permute.xlu0 %1213 }
0x292e   :  { %1322 = vrot.lane.b32.xlu1 %v1320_v47, %s2485_s28 }
0x292f   :  { %v1432_v37 = vpop.permute.xlu0 %1431 }
0x2932   :  { %1540 = vrot.lane.b32.xlu1 %v1538_v49, %s2485_s28 }
0x2933   :  { %v1650_v22 = vpop.permute.xlu0 %1649 }
0x2936   :  { %1758 = vrot.lane.b32.xlu1 %v1756_v50, %s2485_s28 }
0x293a   :  { %1867 = vrot.lane.b32.xlu1 %v1865_v32, %s2485_s28 }
0x298c   :  { %v1856_v42 = vpop.permute.xlu1 %1855 }
0x298d   :  { %v1858_v52 = vadd.f32 %v1856_v42, %v1848_v51 }
0x298f   :  { %2478 = vtanh.f32 %v1858_v52 }
0x2990   :  { %v451_v58 = vpop.permute.xlu1 %450 }
0x2991   :  { %v453_v59 = vmul.f32 %v451_v58, %v2681_v23 }
0x2993   :  { %v454_v38 = vadd.f32 %v453_v59, %v344_v28 }
0x2994   :  { %v669_v61 = vpop.permute.xlu1 %668 }
0x2995   :  { %v563_v4 = vadd.f32 %v562_v63, %v454_v38  ;;  %v671_v7 = vmul.f32 %v669_v61, %v2704_v12  ;;  %v1216_v12 = vmul.f32 %v1214_v53, %v2784_v14  ;;  %v1652_v14 = vmul.f32 %v1650_v22, %v2848_v56 }
0x2997   :  { %v672_v3 = vadd.f32 %v671_v7, %v563_v4 }
0x2998   :  { %v887_v0 = vpop.permute.xlu1 %886 }
0x2999   :  { %v2479_v55 = vpop.eup %2478  ;;  %v781_v6 = vadd.f32 %v780_v11, %v672_v3  ;;  %v889_v44 = vmul.f32 %v887_v0, %v2736_v62  ;;  %v1434_v62 = vmul.f32 %v1432_v37, %v2816_v1 }
0x299a   :  { %1861 = vrot.lane.b32.xlu0 %v2479_v55, %s2483_s24 }
0x299b   :  { %v890_v23 = vadd.f32 %v889_v44, %v781_v6 }
0x299c   :  { %v1105_v9 = vpop.permute.xlu1 %1104 }
0x299d   :  { %v999_v10 = vadd.f32 %v998_v2, %v890_v23  ;;  %v1107_v13 = vmul.f32 %v1105_v9, %v2768_v54  ;;  %v1879_v54 = vld [vmem:[%s2961_s1 + $0x31] sm:$0x1] }
0x299e   :  { %2382 = vpush %v1879_v54 }
0x299f   :  { %v1108_v15 = vadd.f32 %v1107_v13, %v999_v10 }
0x29a0   :  { %v1323_v16 = vpop.permute.xlu1 %1322 }
0x29a1   :  { %v1217_v17 = vadd.f32 %v1216_v12, %v1108_v15  ;;  %v1325_v18 = vmul.f32 %v1323_v16, %v2800_v41 }
0x29a3   :  { %v1326_v19 = vadd.f32 %v1325_v18, %v1217_v17 }
0x29a4   :  { %v1541_v30 = vpop.permute.xlu1 %1540 }
0x29a5   :  { %v1435_v40 = vadd.f32 %v1434_v62, %v1326_v19  ;;  %v1543_v21 = vmul.f32 %v1541_v30, %v2832_v25 }
0x29a7   :  { %v1544_v24 = vadd.f32 %v1543_v21, %v1435_v40 }
0x29a8   :  { %v1759_v46 = vpop.permute.xlu1 %1758 }
0x29a9   :  { %v1653_v48 = vadd.f32 %v1652_v14, %v1544_v24  ;;  %v1761_v41 = vmul.f32 %v1759_v46, %v2863_v34 }
0x29ab   :  { %v1762_v31 = vadd.f32 %v1761_v41, %v1653_v48 }
0x29ac   :  { %v1868_v29 = vpop.permute.xlu1 %1867 }
0x29cf   :  { %s2383_s1 = spop %2382 }
0x29d0   :  { %v1881_v35 = vstv %s2383_s1 }
0x2a0c   :  { %v1862_v27 = vpop.permute.xlu0 %1861 }
0x2a0d   :  { %v1864_v1 = vmul.f32 %v2870_v20, %v1862_v27 }
0x2a0f   :  { %v1870_v26 = vmul.f32 %v1868_v29, %v1864_v1 }
0x2a11   :  { %v1871_v25 = vadd.f32 %v1870_v26, %v1762_v31 }
0x2a13   :  { %1873 = vrot.lane.b32.xlu0 %v1871_v25, %s2484_s25 }
0x2a85   :  { %v1874_v33 = vpop.permute.xlu0 %1873 }
0x2a86   :  { %v1876_v36 = vsel %vm239_vm2, %v1874_v33, 0.0 }
0x2a87   :  { %1877 = vadd.xlane.f32.xlu1 %v1876_v36 }
0x2b14   :  { %v1878_v56 = vpop.xlane.xlu1 %1877 }
0x2b15   :  { %v1882_v39 = vadd.f32 %v1881_v35, %v1878_v56 }
0x2b17   :  { %1884 = vst.msk [vmem:[%s2963_s2] sm:$0xff] %vm1883_vm3, %v1882_v39 }

</bundles_post_ra>
